<compile_context>
chip_gen: v7x
topology: tpu7x:2x2x1
jax: 0.10.0
libtpu: 0.0.40
codegen_flags: <defaults>
</compile_context>

<pallas_src>
import functools

import jax
import jax.numpy as jnp
from jax import lax
from jax.experimental import pallas as pl
from jax.experimental.pallas import tpu as pltpu


def _preact_res_block_kernel(
    x_ref, bn1s_ref, bn1b_ref, w1_ref, bn2s_ref, bn2b_ref, w2_ref, b2_ref,
    o_ref, *, B, C, H, W, K):
  HW = H * W
  PAD = (K // 2) * W + (K // 2)   # flat zero-pad covering the worst tap shift

  # Column-validity masks for horizontal tap offsets (shared by both convs):
  # a flat shift by dh*W+dw wraps across rows at the left/right image border,
  # so columns where x+dw falls outside [0, W) must be zeroed.  Vertical
  # overflow is already covered by the flat zero pad (see rev-2 derivation).
  col = lax.broadcasted_iota(jnp.int32, (1, HW), 1) % W
  masks = {
      dw: jnp.logical_and(col + dw >= 0, col + dw < W).astype(jnp.float32)
      for dw in range(-(K // 2), K // 2 + 1) if dw != 0
  }

  def conv(h, w_ref):
    """Same-padded KxK conv of h (C, HW) as ONE MXU matmul.

    Builds a (K*K*C, HW) slab of the 9 shifted/masked taps (stacked along the
    contraction axis), casts it to bf16, and multiplies by the matmul-ready
    bf16 weight (C_out, K*K*C_in) with f32 accumulation.
    """
    zpad = jnp.zeros((C, PAD), jnp.float32)
    hp = jnp.concatenate([zpad, h, zpad], axis=1)        # one pad per conv
    pieces = []
    for kh in range(K):
      dh = kh - K // 2
      for kw in range(K):
        dw = kw - K // 2
        start = PAD + dh * W + dw
        sl = hp[:, start:start + HW]                     # static lane slice
        if dw != 0:
          sl = sl * masks[dw]                            # zero wrapped cols
        pieces.append(sl)
    slab = jnp.concatenate(pieces, axis=0).astype(jnp.bfloat16)  # (K*K*C, HW)
    return jnp.dot(w_ref[...], slab, preferred_element_type=jnp.float32)

  def body(b, carry):
    x = x_ref[b].astype(jnp.float32)                     # (C, HW)
    # ---- BN1 (eval-mode affine); (C,1) params broadcast along lanes (f32).
    h = x * bn1s_ref[...] + bn1b_ref[...]
    # ---- Pad + Conv1 (no bias), single bf16 MXU matmul, f32 accumulate.
    h = conv(h, w1_ref)
    # ---- BN2 + ReLU (f32 VPU).
    h = jnp.maximum(h * bn2s_ref[...] + bn2b_ref[...], 0.0)
    # ---- Pad + Conv2 + bias.
    h = conv(h, w2_ref) + b2_ref[...]
    # ---- Residual: re-read x_ref[b] (no long-lived f32 copy across convs).
    o_ref[b] = (x_ref[b].astype(jnp.float32) + h).astype(o_ref.dtype)
    return carry

  lax.fori_loop(0, B, body, 0)


def _pick_vmem_limit():
  """Generation-aware scoped-VMEM limit (raise on 128-MiB parts, cap on v7x)."""
  try:
    cap = int(pltpu.get_tpu_info().vmem_capacity_bytes)
  except Exception:
    return 64 * 1024 * 1024
  if cap >= 128 * 1024 * 1024:
    return 100 * 1024 * 1024          # v5e / v6e: big blocks amortize overhead
  return 48 * 1024 * 1024             # v7x (64 MiB physical): leave headroom


def preactivation_residual_block(x, bn1_s, bn1_b, w1, bn2_s, bn2_b, w2, b2,
                                 *, batch_block=1):
  """x: (N, C, H, W) float32.  w1, w2: (C, C, K, K) OIHW.  b2: (C,)."""
  N, C, H, W = x.shape
  K = w1.shape[-1]
  HW = H * W
  assert N % batch_block == 0

  # Lane-dense activation layout: (N, C, H*W) -- a free reshape of NCHW.
  x_flat = x.reshape(N, C, HW)
  # Matmul-ready stacked weights: (C_out, K*K*C_in) with the tap index on the
  # contraction axis, pre-cast to bf16 for the MXU.
  stack = lambda w: w.transpose(0, 2, 3, 1).reshape(C, K * K * C).astype(
      jnp.bfloat16)
  w1_s, w2_s = stack(w1), stack(w2)
  # Per-channel parameters as f32 (C, 1) columns (broadcast over lanes).
  col = lambda v: v.reshape(C, 1).astype(jnp.float32)

  kernel = functools.partial(_preact_res_block_kernel,
                             B=batch_block, C=C, H=H, W=W, K=K)
  act_spec = pl.BlockSpec((batch_block, C, HW), lambda n: (n, 0, 0))
  vmem_limit = _pick_vmem_limit()

  def run(single_buffer_consts):
    if single_buffer_consts:
      # Grid-invariant operands: single-buffered (no wasted 2nd copy in VMEM).
      const = lambda shape: pl.BlockSpec(shape, lambda n: (0,) * len(shape),
                                         pipeline_mode=pl.Buffered(1))
    else:
      const = lambda shape: pl.BlockSpec(shape, lambda n: (0,) * len(shape))
    return pl.pallas_call(
        kernel,
        out_shape=jax.ShapeDtypeStruct((N, C, HW), x.dtype),
        grid=(N // batch_block,),
        in_specs=[
            act_spec,                       # x (lane-dense activations)
            const((C, 1)),                  # bn1 scale
            const((C, 1)),                  # bn1 bias
            const((C, K * K * C)),          # conv1 weights (bf16, tap-stacked)
            const((C, 1)),                  # bn2 scale
            const((C, 1)),                  # bn2 bias
            const((C, K * K * C)),          # conv2 weights (bf16, tap-stacked)
            const((C, 1)),                  # conv2 bias
        ],
        out_specs=act_spec,
        compiler_params=pltpu.CompilerParams(
            dimension_semantics=("parallel",),
            vmem_limit_bytes=vmem_limit),
    )(x_flat, col(bn1_s), col(bn1_b), w1_s, col(bn2_s), col(bn2_b), w2_s,
      col(b2))

  try:
    out = run(True)
  except Exception:
    # pipeline_mode=pl.Buffered(1) not supported by this jax build: fall back
    # to default double-buffering (correctness is unaffected).
    out = run(False)
  return out.reshape(N, C, H, W)


def _reference(x, bn1_s, bn1_b, w1, bn2_s, bn2_b, w2, b2, *, mxu_dtype=None):
  """Pure-JAX reference (NCHW).  mxu_dtype=bf16 mirrors the kernel's MXU casts."""
  def bn(h, s, b):
    return h * s[None, :, None, None] + b[None, :, None, None]

  def conv(h, w):
    if mxu_dtype is not None:
      h = h.astype(mxu_dtype)
      w = w.astype(mxu_dtype)
    return lax.conv_general_dilated(
        h, w, (1, 1), ((1, 1), (1, 1)),
        dimension_numbers=("NCHW", "OIHW", "NCHW"),
        preferred_element_type=jnp.float32)

  h = bn(x, bn1_s, bn1_b)
  h = conv(h, w1)
  h = jnp.maximum(bn(h, bn2_s, bn2_b), 0.0)
  h = conv(h, w2) + b2[None, :, None, None]
  return x + h


if __name__ == "__main__":
  N, C, H, W, K = 2, 8, 16, 16, 3
  eps = 1e-5

  key = jax.random.PRNGKey(0)
  keys = jax.random.split(key, 12)

  x = jax.random.normal(keys[0], (N, C, H, W), jnp.float32)

  # BatchNorm2d #1 parameters (eval mode: fold into scale/bias).
  g1 = 1.0 + 0.1 * jax.random.normal(keys[1], (C,), jnp.float32)
  be1 = 0.1 * jax.random.normal(keys[2], (C,), jnp.float32)
  mu1 = 0.1 * jax.random.normal(keys[3], (C,), jnp.float32)
  var1 = jnp.abs(1.0 + 0.1 * jax.random.normal(keys[4], (C,), jnp.float32))
  bn1_s = g1 / jnp.sqrt(var1 + eps)
  bn1_b = be1 - mu1 * bn1_s

  # Conv #1: (C, C, K, K), no bias.
  w1 = 0.1 * jax.random.normal(keys[5], (C, C, K, K), jnp.float32)

  # BatchNorm2d #2.
  g2 = 1.0 + 0.1 * jax.random.normal(keys[6], (C,), jnp.float32)
  be2 = 0.1 * jax.random.normal(keys[7], (C,), jnp.float32)
  mu2 = 0.1 * jax.random.normal(keys[8], (C,), jnp.float32)
  var2 = jnp.abs(1.0 + 0.1 * jax.random.normal(keys[9], (C,), jnp.float32))
  bn2_s = g2 / jnp.sqrt(var2 + eps)
  bn2_b = be2 - mu2 * bn2_s

  # Conv #2: (C, C, K, K), with bias.
  w2 = 0.1 * jax.random.normal(keys[10], (C, C, K, K), jnp.float32)
  b2 = 0.1 * jax.random.normal(keys[11], (C,), jnp.float32)

  out = preactivation_residual_block(x, bn1_s, bn1_b, w1, bn2_s, bn2_b, w2, b2)
  out = jax.block_until_ready(out)
  assert out.shape == (N, C, H, W)

  # Tight check against a reference that mirrors the kernel's bf16 MXU casts
  # (differences are accumulation-order only, plus rare bf16 rounding flips).
  ref_bf16 = _reference(x, bn1_s, bn1_b, w1, bn2_s, bn2_b, w2, b2,
                        mxu_dtype=jnp.bfloat16)
  assert jnp.allclose(out, ref_bf16, atol=1e-2, rtol=1e-2), (
      float(jnp.max(jnp.abs(out - ref_bf16))))

  # Loose check against the pure-f32 reference (bf16 MXU operands drift ~1e-3).
  ref_f32 = _reference(x, bn1_s, bn1_b, w1, bn2_s, bn2_b, w2, b2)
  assert jnp.allclose(out, ref_f32, atol=5e-2, rtol=5e-2), (
      float(jnp.max(jnp.abs(out - ref_f32))))

  print("KERNEL_OK")
</pallas_src>

<mosaic_0001>
module attributes {stable_mosaic.version = 11 : i64} {
  func.func @_preact_res_block_kernel(%arg0: i32, %arg1: memref<1x8x256xf32, #tpu.memory_space<vmem>>, %arg2: memref<8x1xf32, #tpu.memory_space<vmem>>, %arg3: memref<8x1xf32, #tpu.memory_space<vmem>>, %arg4: memref<8x72xbf16, #tpu.memory_space<vmem>>, %arg5: memref<8x1xf32, #tpu.memory_space<vmem>>, %arg6: memref<8x1xf32, #tpu.memory_space<vmem>>, %arg7: memref<8x72xbf16, #tpu.memory_space<vmem>>, %arg8: memref<8x1xf32, #tpu.memory_space<vmem>>, %arg9: memref<1x8x256xf32, #tpu.memory_space<vmem>>) attributes {dimension_semantics = [#tpu.dimension_semantics<parallel>], iteration_bounds = array<i64: 2>, scalar_prefetch = 0 : i64, scratch_operands = 0 : i64, tpu.core_type = #tpu.core_type<tc>, window_params = [{transform_indices = @transform_0, window_bounds = array<i64: 1, 8, 256>}, {pipeline_mode = #tpu.pipeline_mode<synchronous>, transform_indices = @transform_1, window_bounds = array<i64: 8, 1>}, {pipeline_mode = #tpu.pipeline_mode<synchronous>, transform_indices = @transform_2, window_bounds = array<i64: 8, 1>}, {pipeline_mode = #tpu.pipeline_mode<synchronous>, transform_indices = @transform_3, window_bounds = array<i64: 8, 72>}, {pipeline_mode = #tpu.pipeline_mode<synchronous>, transform_indices = @transform_4, window_bounds = array<i64: 8, 1>}, {pipeline_mode = #tpu.pipeline_mode<synchronous>, transform_indices = @transform_5, window_bounds = array<i64: 8, 1>}, {pipeline_mode = #tpu.pipeline_mode<synchronous>, transform_indices = @transform_6, window_bounds = array<i64: 8, 72>}, {pipeline_mode = #tpu.pipeline_mode<synchronous>, transform_indices = @transform_7, window_bounds = array<i64: 8, 1>}, {transform_indices = @transform_8, window_bounds = array<i64: 1, 8, 256>}]} {
    %0 = tpu.iota {dimensions = array<i32: 1>} : vector<1x256xi32>
    %c16_i32 = arith.constant 16 : i32
    %c0_i32 = arith.constant 0 : i32
    %1 = arith.cmpi eq, %c16_i32, %c0_i32 : i32
    %c1_i32 = arith.constant 1 : i32
    %2 = arith.select %1, %c1_i32, %c16_i32 : i32
    %3 = vector.broadcast %2 : i32 to vector<1x256xi32>
    %4 = arith.remsi %0, %3 : vector<1x256xi32>
    %c0_i32_0 = arith.constant 0 : i32
    %5 = vector.broadcast %c0_i32_0 : i32 to vector<1x256xi32>
    %6 = arith.cmpi ne, %4, %5 : vector<1x256xi32>
    %c0_i32_1 = arith.constant 0 : i32
    %7 = vector.broadcast %c0_i32_1 : i32 to vector<1x256xi32>
    %8 = arith.cmpi slt, %4, %7 : vector<1x256xi32>
    %c0_i32_2 = arith.constant 0 : i32
    %9 = arith.cmpi slt, %2, %c0_i32_2 : i32
    %10 = vector.broadcast %9 : i1 to vector<1x256xi1>
    %11 = vector.broadcast %10 : vector<1x256xi1> to vector<1x256xi1>
    %12 = arith.xori %8, %11 : vector<1x256xi1>
    %13 = arith.andi %12, %6 : vector<1x256xi1>
    %14 = vector.broadcast %2 : i32 to vector<1x256xi32>
    %15 = arith.addi %4, %14 : vector<1x256xi32>
    %16 = arith.select %13, %15, %4 : vector<1x256xi1>, vector<1x256xi32>
    %c-1_i32 = arith.constant -1 : i32
    %17 = vector.broadcast %c-1_i32 : i32 to vector<1x256xi32>
    %18 = arith.addi %16, %17 : vector<1x256xi32>
    %c0_i32_3 = arith.constant 0 : i32
    %19 = vector.broadcast %c0_i32_3 : i32 to vector<1x256xi32>
    %20 = arith.cmpi sge, %18, %19 : vector<1x256xi32>
    %c-1_i32_4 = arith.constant -1 : i32
    %21 = vector.broadcast %c-1_i32_4 : i32 to vector<1x256xi32>
    %22 = arith.addi %16, %21 : vector<1x256xi32>
    %c16_i32_5 = arith.constant 16 : i32
    %23 = vector.broadcast %c16_i32_5 : i32 to vector<1x256xi32>
    %24 = arith.cmpi slt, %22, %23 : vector<1x256xi32>
    %25 = arith.andi %20, %24 : vector<1x256xi1>
    %26 = arith.extui %25 : vector<1x256xi1> to vector<1x256xi32>
    %27 = arith.sitofp %26 : vector<1x256xi32> to vector<1x256xf32>
    %c1_i32_6 = arith.constant 1 : i32
    %28 = vector.broadcast %c1_i32_6 : i32 to vector<1x256xi32>
    %29 = arith.addi %16, %28 : vector<1x256xi32>
    %c0_i32_7 = arith.constant 0 : i32
    %30 = vector.broadcast %c0_i32_7 : i32 to vector<1x256xi32>
    %31 = arith.cmpi sge, %29, %30 : vector<1x256xi32>
    %c1_i32_8 = arith.constant 1 : i32
    %32 = vector.broadcast %c1_i32_8 : i32 to vector<1x256xi32>
    %33 = arith.addi %16, %32 : vector<1x256xi32>
    %c16_i32_9 = arith.constant 16 : i32
    %34 = vector.broadcast %c16_i32_9 : i32 to vector<1x256xi32>
    %35 = arith.cmpi slt, %33, %34 : vector<1x256xi32>
    %36 = arith.andi %31, %35 : vector<1x256xi1>
    %37 = arith.extui %36 : vector<1x256xi1> to vector<1x256xi32>
    %38 = arith.sitofp %37 : vector<1x256xi32> to vector<1x256xf32>
    %c0_i32_10 = arith.constant 0 : i32
    %39 = arith.index_cast %c0_i32_10 : i32 to index
    %c0 = arith.constant 0 : index
    %c0_11 = arith.constant 0 : index
    %40 = vector.load %arg1[%39, %c0, %c0_11] : memref<1x8x256xf32, #tpu.memory_space<vmem>>, vector<1x8x256xf32>
    %41 = vector.shape_cast %40 : vector<1x8x256xf32> to vector<8x256xf32>
    %c0_12 = arith.constant 0 : index
    %c0_13 = arith.constant 0 : index
    %42 = vector.load %arg2[%c0_12, %c0_13] : memref<8x1xf32, #tpu.memory_space<vmem>>, vector<8x1xf32>
    %43 = vector.broadcast %42 : vector<8x1xf32> to vector<8x256xf32>
    %44 = arith.mulf %41, %43 : vector<8x256xf32>
    %c0_14 = arith.constant 0 : index
    %c0_15 = arith.constant 0 : index
    %45 = vector.load %arg3[%c0_14, %c0_15] : memref<8x1xf32, #tpu.memory_space<vmem>>, vector<8x1xf32>
    %46 = vector.broadcast %45 : vector<8x1xf32> to vector<8x256xf32>
    %47 = arith.addf %44, %46 : vector<8x256xf32>
    %cst = arith.constant 0.000000e+00 : f32
    %48 = vector.broadcast %cst : f32 to vector<8x17xf32>
    %49 = tpu.concatenate %48, %47, %48 in 1 : vector<8x17xf32>, vector<8x256xf32>, vector<8x17xf32> -> vector<8x290xf32>
    %50 = vector.extract_strided_slice %49 {offsets = [0, 0], sizes = [8, 256], strides = [1, 1]} : vector<8x290xf32> to vector<8x256xf32>
    %51 = vector.broadcast %27 : vector<1x256xf32> to vector<8x256xf32>
    %52 = arith.mulf %50, %51 : vector<8x256xf32>
    %53 = vector.extract_strided_slice %49 {offsets = [0, 1], sizes = [8, 256], strides = [1, 1]} : vector<8x290xf32> to vector<8x256xf32>
    %54 = vector.extract_strided_slice %49 {offsets = [0, 2], sizes = [8, 256], strides = [1, 1]} : vector<8x290xf32> to vector<8x256xf32>
    %55 = vector.broadcast %38 : vector<1x256xf32> to vector<8x256xf32>
    %56 = arith.mulf %54, %55 : vector<8x256xf32>
    %57 = vector.extract_strided_slice %49 {offsets = [0, 16], sizes = [8, 256], strides = [1, 1]} : vector<8x290xf32> to vector<8x256xf32>
    %58 = vector.broadcast %27 : vector<1x256xf32> to vector<8x256xf32>
    %59 = arith.mulf %57, %58 : vector<8x256xf32>
    %60 = vector.extract_strided_slice %49 {offsets = [0, 17], sizes = [8, 256], strides = [1, 1]} : vector<8x290xf32> to vector<8x256xf32>
    %61 = vector.extract_strided_slice %49 {offsets = [0, 18], sizes = [8, 256], strides = [1, 1]} : vector<8x290xf32> to vector<8x256xf32>
    %62 = vector.broadcast %38 : vector<1x256xf32> to vector<8x256xf32>
    %63 = arith.mulf %61, %62 : vector<8x256xf32>
    %64 = vector.extract_strided_slice %49 {offsets = [0, 32], sizes = [8, 256], strides = [1, 1]} : vector<8x290xf32> to vector<8x256xf32>
    %65 = vector.broadcast %27 : vector<1x256xf32> to vector<8x256xf32>
    %66 = arith.mulf %64, %65 : vector<8x256xf32>
    %67 = vector.extract_strided_slice %49 {offsets = [0, 33], sizes = [8, 256], strides = [1, 1]} : vector<8x290xf32> to vector<8x256xf32>
    %68 = vector.extract_strided_slice %49 {offsets = [0, 34], sizes = [8, 256], strides = [1, 1]} : vector<8x290xf32> to vector<8x256xf32>
    %69 = vector.broadcast %38 : vector<1x256xf32> to vector<8x256xf32>
    %70 = arith.mulf %68, %69 : vector<8x256xf32>
    %71 = tpu.concatenate %52, %53, %56, %59, %60, %63, %66, %67, %70 in 0 : vector<8x256xf32>, vector<8x256xf32>, vector<8x256xf32>, vector<8x256xf32>, vector<8x256xf32>, vector<8x256xf32>, vector<8x256xf32>, vector<8x256xf32>, vector<8x256xf32> -> vector<72x256xf32>
    %72 = arith.truncf %71 : vector<72x256xf32> to vector<72x256xbf16>
    %c0_16 = arith.constant 0 : index
    %c0_17 = arith.constant 0 : index
    %73 = vector.load %arg4[%c0_16, %c0_17] : memref<8x72xbf16, #tpu.memory_space<vmem>>, vector<8x72xbf16>
    %cst_18 = arith.constant dense<0.000000e+00> : vector<8x256xf32>
    %74 = tpu.matmul %73, %72, %cst_18 {dimension_numbers = #tpu.dot_dimension_numbers<[1], [0], [0], [1], [0, 0, 1, 1], [], []>} : vector<8x72xbf16>, vector<72x256xbf16>, vector<8x256xf32> -> vector<8x256xf32>
    %c0_19 = arith.constant 0 : index
    %c0_20 = arith.constant 0 : index
    %75 = vector.load %arg5[%c0_19, %c0_20] : memref<8x1xf32, #tpu.memory_space<vmem>>, vector<8x1xf32>
    %76 = vector.broadcast %75 : vector<8x1xf32> to vector<8x256xf32>
    %77 = arith.mulf %74, %76 : vector<8x256xf32>
    %c0_21 = arith.constant 0 : index
    %c0_22 = arith.constant 0 : index
    %78 = vector.load %arg6[%c0_21, %c0_22] : memref<8x1xf32, #tpu.memory_space<vmem>>, vector<8x1xf32>
    %79 = vector.broadcast %78 : vector<8x1xf32> to vector<8x256xf32>
    %80 = arith.addf %77, %79 : vector<8x256xf32>
    %cst_23 = arith.constant 0.000000e+00 : f32
    %81 = vector.broadcast %cst_23 : f32 to vector<8x256xf32>
    %82 = arith.maximumf %80, %81 : vector<8x256xf32>
    %cst_24 = arith.constant 0.000000e+00 : f32
    %83 = vector.broadcast %cst_24 : f32 to vector<8x17xf32>
    %84 = tpu.concatenate %83, %82, %83 in 1 : vector<8x17xf32>, vector<8x256xf32>, vector<8x17xf32> -> vector<8x290xf32>
    %85 = vector.extract_strided_slice %84 {offsets = [0, 0], sizes = [8, 256], strides = [1, 1]} : vector<8x290xf32> to vector<8x256xf32>
    %86 = vector.broadcast %27 : vector<1x256xf32> to vector<8x256xf32>
    %87 = arith.mulf %85, %86 : vector<8x256xf32>
    %88 = vector.extract_strided_slice %84 {offsets = [0, 1], sizes = [8, 256], strides = [1, 1]} : vector<8x290xf32> to vector<8x256xf32>
    %89 = vector.extract_strided_slice %84 {offsets = [0, 2], sizes = [8, 256], strides = [1, 1]} : vector<8x290xf32> to vector<8x256xf32>
    %90 = vector.broadcast %38 : vector<1x256xf32> to vector<8x256xf32>
    %91 = arith.mulf %89, %90 : vector<8x256xf32>
    %92 = vector.extract_strided_slice %84 {offsets = [0, 16], sizes = [8, 256], strides = [1, 1]} : vector<8x290xf32> to vector<8x256xf32>
    %93 = vector.broadcast %27 : vector<1x256xf32> to vector<8x256xf32>
    %94 = arith.mulf %92, %93 : vector<8x256xf32>
    %95 = vector.extract_strided_slice %84 {offsets = [0, 17], sizes = [8, 256], strides = [1, 1]} : vector<8x290xf32> to vector<8x256xf32>
    %96 = vector.extract_strided_slice %84 {offsets = [0, 18], sizes = [8, 256], strides = [1, 1]} : vector<8x290xf32> to vector<8x256xf32>
    %97 = vector.broadcast %38 : vector<1x256xf32> to vector<8x256xf32>
    %98 = arith.mulf %96, %97 : vector<8x256xf32>
    %99 = vector.extract_strided_slice %84 {offsets = [0, 32], sizes = [8, 256], strides = [1, 1]} : vector<8x290xf32> to vector<8x256xf32>
    %100 = vector.broadcast %27 : vector<1x256xf32> to vector<8x256xf32>
    %101 = arith.mulf %99, %100 : vector<8x256xf32>
    %102 = vector.extract_strided_slice %84 {offsets = [0, 33], sizes = [8, 256], strides = [1, 1]} : vector<8x290xf32> to vector<8x256xf32>
    %103 = vector.extract_strided_slice %84 {offsets = [0, 34], sizes = [8, 256], strides = [1, 1]} : vector<8x290xf32> to vector<8x256xf32>
    %104 = vector.broadcast %38 : vector<1x256xf32> to vector<8x256xf32>
    %105 = arith.mulf %103, %104 : vector<8x256xf32>
    %106 = tpu.concatenate %87, %88, %91, %94, %95, %98, %101, %102, %105 in 0 : vector<8x256xf32>, vector<8x256xf32>, vector<8x256xf32>, vector<8x256xf32>, vector<8x256xf32>, vector<8x256xf32>, vector<8x256xf32>, vector<8x256xf32>, vector<8x256xf32> -> vector<72x256xf32>
    %107 = arith.truncf %106 : vector<72x256xf32> to vector<72x256xbf16>
    %c0_25 = arith.constant 0 : index
    %c0_26 = arith.constant 0 : index
    %108 = vector.load %arg7[%c0_25, %c0_26] : memref<8x72xbf16, #tpu.memory_space<vmem>>, vector<8x72xbf16>
    %cst_27 = arith.constant dense<0.000000e+00> : vector<8x256xf32>
    %109 = tpu.matmul %108, %107, %cst_27 {dimension_numbers = #tpu.dot_dimension_numbers<[1], [0], [0], [1], [0, 0, 1, 1], [], []>} : vector<8x72xbf16>, vector<72x256xbf16>, vector<8x256xf32> -> vector<8x256xf32>
    %c0_28 = arith.constant 0 : index
    %c0_29 = arith.constant 0 : index
    %110 = vector.load %arg8[%c0_28, %c0_29] : memref<8x1xf32, #tpu.memory_space<vmem>>, vector<8x1xf32>
    %111 = vector.broadcast %110 : vector<8x1xf32> to vector<8x256xf32>
    %112 = arith.addf %109, %111 : vector<8x256xf32>
    %113 = arith.index_cast %c0_i32_10 : i32 to index
    %c0_30 = arith.constant 0 : index
    %c0_31 = arith.constant 0 : index
    %114 = vector.load %arg1[%113, %c0_30, %c0_31] : memref<1x8x256xf32, #tpu.memory_space<vmem>>, vector<1x8x256xf32>
    %115 = vector.shape_cast %114 : vector<1x8x256xf32> to vector<8x256xf32>
    %116 = arith.addf %115, %112 : vector<8x256xf32>
    %117 = arith.index_cast %c0_i32_10 : i32 to index
    %c0_32 = arith.constant 0 : index
    %c0_33 = arith.constant 0 : index
    %118 = vector.load %arg9[%117, %c0_32, %c0_33] : memref<1x8x256xf32, #tpu.memory_space<vmem>>, vector<1x8x256xf32>
    %119 = vector.shape_cast %118 : vector<1x8x256xf32> to vector<8x256xf32>
    %120 = vector.shape_cast %116 : vector<8x256xf32> to vector<1x8x256xf32>
    tpu.vector_store %arg9[%117, %c0_32, %c0_33], %120 {strides = array<i32>} : memref<1x8x256xf32, #tpu.memory_space<vmem>>, vector<1x8x256xf32>,
    %c1_i32_34 = arith.constant 1 : i32
    return
  }
  func.func @transform_0(%arg0: i32) -> (i32, i32, i32) {
    %c0_i32 = arith.constant 0 : i32
    %c0_i32_0 = arith.constant 0 : i32
    %c0_i32_1 = arith.constant 0 : i32
    return %arg0, %c0_i32, %c0_i32_0 : i32, i32, i32
  }
  func.func @transform_1(%arg0: i32) -> (i32, i32) {
    %c0_i32 = arith.constant 0 : i32
    %c0_i32_0 = arith.constant 0 : i32
    %c0_i32_1 = arith.constant 0 : i32
    return %c0_i32, %c0_i32_0 : i32, i32
  }
  func.func @transform_2(%arg0: i32) -> (i32, i32) {
    %c0_i32 = arith.constant 0 : i32
    %c0_i32_0 = arith.constant 0 : i32
    %c0_i32_1 = arith.constant 0 : i32
    return %c0_i32, %c0_i32_0 : i32, i32
  }
  func.func @transform_3(%arg0: i32) -> (i32, i32) {
    %c0_i32 = arith.constant 0 : i32
    %c0_i32_0 = arith.constant 0 : i32
    %c0_i32_1 = arith.constant 0 : i32
    return %c0_i32, %c0_i32_0 : i32, i32
  }
  func.func @transform_4(%arg0: i32) -> (i32, i32) {
    %c0_i32 = arith.constant 0 : i32
    %c0_i32_0 = arith.constant 0 : i32
    %c0_i32_1 = arith.constant 0 : i32
    return %c0_i32, %c0_i32_0 : i32, i32
  }
  func.func @transform_5(%arg0: i32) -> (i32, i32) {
    %c0_i32 = arith.constant 0 : i32
    %c0_i32_0 = arith.constant 0 : i32
    %c0_i32_1 = arith.constant 0 : i32
    return %c0_i32, %c0_i32_0 : i32, i32
  }
  func.func @transform_6(%arg0: i32) -> (i32, i32) {
    %c0_i32 = arith.constant 0 : i32
    %c0_i32_0 = arith.constant 0 : i32
    %c0_i32_1 = arith.constant 0 : i32
    return %c0_i32, %c0_i32_0 : i32, i32
  }
  func.func @transform_7(%arg0: i32) -> (i32, i32) {
    %c0_i32 = arith.constant 0 : i32
    %c0_i32_0 = arith.constant 0 : i32
    %c0_i32_1 = arith.constant 0 : i32
    return %c0_i32, %c0_i32_0 : i32, i32
  }
  func.func @transform_8(%arg0: i32) -> (i32, i32, i32) {
    %c0_i32 = arith.constant 0 : i32
    %c0_i32_0 = arith.constant 0 : i32
    %c0_i32_1 = arith.constant 0 : i32
    return %arg0, %c0_i32, %c0_i32_0 : i32, i32, i32
  }
}

module attributes {stable_mosaic.version = 11 : i64} {
  func.func @_preact_res_block_kernel(%arg0: i32, %arg1: memref<1x8x256xf32, #tpu.memory_space<vmem>>, %arg2: memref<8x1xf32, #tpu.memory_space<vmem>>, %arg3: memref<8x1xf32, #tpu.memory_space<vmem>>, %arg4: memref<8x72xbf16, #tpu.memory_space<vmem>>, %arg5: memref<8x1xf32, #tpu.memory_space<vmem>>, %arg6: memref<8x1xf32, #tpu.memory_space<vmem>>, %arg7: memref<8x72xbf16, #tpu.memory_space<vmem>>, %arg8: memref<8x1xf32, #tpu.memory_space<vmem>>, %arg9: memref<1x8x256xf32, #tpu.memory_space<vmem>>) attributes {dimension_semantics = [#tpu.dimension_semantics<parallel>], iteration_bounds = array<i64: 2>, scalar_prefetch = 0 : i64, scratch_operands = 0 : i64, tpu.core_type = #tpu.core_type<tc>, window_params = [{transform_indices = @transform_0, window_bounds = array<i64: 1, 8, 256>}, {pipeline_mode = #tpu.pipeline_mode<synchronous>, transform_indices = @transform_1, window_bounds = array<i64: 8, 1>}, {pipeline_mode = #tpu.pipeline_mode<synchronous>, transform_indices = @transform_2, window_bounds = array<i64: 8, 1>}, {pipeline_mode = #tpu.pipeline_mode<synchronous>, transform_indices = @transform_3, window_bounds = array<i64: 8, 72>}, {pipeline_mode = #tpu.pipeline_mode<synchronous>, transform_indices = @transform_4, window_bounds = array<i64: 8, 1>}, {pipeline_mode = #tpu.pipeline_mode<synchronous>, transform_indices = @transform_5, window_bounds = array<i64: 8, 1>}, {pipeline_mode = #tpu.pipeline_mode<synchronous>, transform_indices = @transform_6, window_bounds = array<i64: 8, 72>}, {pipeline_mode = #tpu.pipeline_mode<synchronous>, transform_indices = @transform_7, window_bounds = array<i64: 8, 1>}, {transform_indices = @transform_8, window_bounds = array<i64: 1, 8, 256>}]} {
    %0 = tpu.iota {dimensions = array<i32: 1>} : vector<1x256xi32>
    %c16_i32 = arith.constant 16 : i32
    %c0_i32 = arith.constant 0 : i32
    %1 = arith.cmpi eq, %c16_i32, %c0_i32 : i32
    %c1_i32 = arith.constant 1 : i32
    %2 = arith.select %1, %c1_i32, %c16_i32 : i32
    %3 = vector.broadcast %2 : i32 to vector<1x256xi32>
    %4 = arith.remsi %0, %3 : vector<1x256xi32>
    %c0_i32_0 = arith.constant 0 : i32
    %5 = vector.broadcast %c0_i32_0 : i32 to vector<1x256xi32>
    %6 = arith.cmpi ne, %4, %5 : vector<1x256xi32>
    %c0_i32_1 = arith.constant 0 : i32
    %7 = vector.broadcast %c0_i32_1 : i32 to vector<1x256xi32>
    %8 = arith.cmpi slt, %4, %7 : vector<1x256xi32>
    %c0_i32_2 = arith.constant 0 : i32
    %9 = arith.cmpi slt, %2, %c0_i32_2 : i32
    %10 = vector.broadcast %9 : i1 to vector<1x256xi1>
    %11 = vector.broadcast %10 : vector<1x256xi1> to vector<1x256xi1>
    %12 = arith.xori %8, %11 : vector<1x256xi1>
    %13 = arith.andi %12, %6 : vector<1x256xi1>
    %14 = vector.broadcast %2 : i32 to vector<1x256xi32>
    %15 = arith.addi %4, %14 : vector<1x256xi32>
    %16 = arith.select %13, %15, %4 : vector<1x256xi1>, vector<1x256xi32>
    %c-1_i32 = arith.constant -1 : i32
    %17 = vector.broadcast %c-1_i32 : i32 to vector<1x256xi32>
    %18 = arith.addi %16, %17 : vector<1x256xi32>
    %c0_i32_3 = arith.constant 0 : i32
    %19 = vector.broadcast %c0_i32_3 : i32 to vector<1x256xi32>
    %20 = arith.cmpi sge, %18, %19 : vector<1x256xi32>
    %c-1_i32_4 = arith.constant -1 : i32
    %21 = vector.broadcast %c-1_i32_4 : i32 to vector<1x256xi32>
    %22 = arith.addi %16, %21 : vector<1x256xi32>
    %c16_i32_5 = arith.constant 16 : i32
    %23 = vector.broadcast %c16_i32_5 : i32 to vector<1x256xi32>
    %24 = arith.cmpi slt, %22, %23 : vector<1x256xi32>
    %25 = arith.andi %20, %24 : vector<1x256xi1>
    %26 = arith.extui %25 : vector<1x256xi1> to vector<1x256xi32>
    %27 = arith.sitofp %26 : vector<1x256xi32> to vector<1x256xf32>
    %c1_i32_6 = arith.constant 1 : i32
    %28 = vector.broadcast %c1_i32_6 : i32 to vector<1x256xi32>
    %29 = arith.addi %16, %28 : vector<1x256xi32>
    %c0_i32_7 = arith.constant 0 : i32
    %30 = vector.broadcast %c0_i32_7 : i32 to vector<1x256xi32>
    %31 = arith.cmpi sge, %29, %30 : vector<1x256xi32>
    %c1_i32_8 = arith.constant 1 : i32
    %32 = vector.broadcast %c1_i32_8 : i32 to vector<1x256xi32>
    %33 = arith.addi %16, %32 : vector<1x256xi32>
    %c16_i32_9 = arith.constant 16 : i32
    %34 = vector.broadcast %c16_i32_9 : i32 to vector<1x256xi32>
    %35 = arith.cmpi slt, %33, %34 : vector<1x256xi32>
    %36 = arith.andi %31, %35 : vector<1x256xi1>
    %37 = arith.extui %36 : vector<1x256xi1> to vector<1x256xi32>
    %38 = arith.sitofp %37 : vector<1x256xi32> to vector<1x256xf32>
    %c0_i32_10 = arith.constant 0 : i32
    %39 = arith.index_cast %c0_i32_10 : i32 to index
    %c0 = arith.constant 0 : index
    %c0_11 = arith.constant 0 : index
    %40 = vector.load %arg1[%39, %c0, %c0_11] : memref<1x8x256xf32, #tpu.memory_space<vmem>>, vector<1x8x256xf32>
    %41 = vector.shape_cast %40 : vector<1x8x256xf32> to vector<8x256xf32>
    %c0_12 = arith.constant 0 : index
    %c0_13 = arith.constant 0 : index
    %42 = vector.load %arg2[%c0_12, %c0_13] : memref<8x1xf32, #tpu.memory_space<vmem>>, vector<8x1xf32>
    %43 = vector.broadcast %42 : vector<8x1xf32> to vector<8x256xf32>
    %44 = arith.mulf %41, %43 : vector<8x256xf32>
    %c0_14 = arith.constant 0 : index
    %c0_15 = arith.constant 0 : index
    %45 = vector.load %arg3[%c0_14, %c0_15] : memref<8x1xf32, #tpu.memory_space<vmem>>, vector<8x1xf32>
    %46 = vector.broadcast %45 : vector<8x1xf32> to vector<8x256xf32>
    %47 = arith.addf %44, %46 : vector<8x256xf32>
    %cst = arith.constant 0.000000e+00 : f32
    %48 = vector.broadcast %cst : f32 to vector<8x17xf32>
    %49 = tpu.concatenate %48, %47, %48 in 1 : vector<8x17xf32>, vector<8x256xf32>, vector<8x17xf32> -> vector<8x290xf32>
    %50 = vector.extract_strided_slice %49 {offsets = [0, 0], sizes = [8, 256], strides = [1, 1]} : vector<8x290xf32> to vector<8x256xf32>
    %51 = vector.broadcast %27 : vector<1x256xf32> to vector<8x256xf32>
    %52 = arith.mulf %50, %51 : vector<8x256xf32>
    %53 = vector.extract_strided_slice %49 {offsets = [0, 1], sizes = [8, 256], strides = [1, 1]} : vector<8x290xf32> to vector<8x256xf32>
    %54 = vector.extract_strided_slice %49 {offsets = [0, 2], sizes = [8, 256], strides = [1, 1]} : vector<8x290xf32> to vector<8x256xf32>
    %55 = vector.broadcast %38 : vector<1x256xf32> to vector<8x256xf32>
    %56 = arith.mulf %54, %55 : vector<8x256xf32>
    %57 = vector.extract_strided_slice %49 {offsets = [0, 16], sizes = [8, 256], strides = [1, 1]} : vector<8x290xf32> to vector<8x256xf32>
    %58 = vector.broadcast %27 : vector<1x256xf32> to vector<8x256xf32>
    %59 = arith.mulf %57, %58 : vector<8x256xf32>
    %60 = vector.extract_strided_slice %49 {offsets = [0, 17], sizes = [8, 256], strides = [1, 1]} : vector<8x290xf32> to vector<8x256xf32>
    %61 = vector.extract_strided_slice %49 {offsets = [0, 18], sizes = [8, 256], strides = [1, 1]} : vector<8x290xf32> to vector<8x256xf32>
    %62 = vector.broadcast %38 : vector<1x256xf32> to vector<8x256xf32>
    %63 = arith.mulf %61, %62 : vector<8x256xf32>
    %64 = vector.extract_strided_slice %49 {offsets = [0, 32], sizes = [8, 256], strides = [1, 1]} : vector<8x290xf32> to vector<8x256xf32>
    %65 = vector.broadcast %27 : vector<1x256xf32> to vector<8x256xf32>
    %66 = arith.mulf %64, %65 : vector<8x256xf32>
    %67 = vector.extract_strided_slice %49 {offsets = [0, 33], sizes = [8, 256], strides = [1, 1]} : vector<8x290xf32> to vector<8x256xf32>
    %68 = vector.extract_strided_slice %49 {offsets = [0, 34], sizes = [8, 256], strides = [1, 1]} : vector<8x290xf32> to vector<8x256xf32>
    %69 = vector.broadcast %38 : vector<1x256xf32> to vector<8x256xf32>
    %70 = arith.mulf %68, %69 : vector<8x256xf32>
    %71 = tpu.concatenate %52, %53, %56, %59, %60, %63, %66, %67, %70 in 0 : vector<8x256xf32>, vector<8x256xf32>, vector<8x256xf32>, vector<8x256xf32>, vector<8x256xf32>, vector<8x256xf32>, vector<8x256xf32>, vector<8x256xf32>, vector<8x256xf32> -> vector<72x256xf32>
    %72 = arith.truncf %71 : vector<72x256xf32> to vector<72x256xbf16>
    %c0_16 = arith.constant 0 : index
    %c0_17 = arith.constant 0 : index
    %73 = vector.load %arg4[%c0_16, %c0_17] : memref<8x72xbf16, #tpu.memory_space<vmem>>, vector<8x72xbf16>
    %cst_18 = arith.constant dense<0.000000e+00> : vector<8x256xf32>
    %74 = tpu.matmul %73, %72, %cst_18 {dimension_numbers = #tpu.dot_dimension_numbers<[1], [0], [0], [1], [0, 0, 1, 1], [], []>} : vector<8x72xbf16>, vector<72x256xbf16>, vector<8x256xf32> -> vector<8x256xf32>
    %c0_19 = arith.constant 0 : index
    %c0_20 = arith.constant 0 : index
    %75 = vector.load %arg5[%c0_19, %c0_20] : memref<8x1xf32, #tpu.memory_space<vmem>>, vector<8x1xf32>
    %76 = vector.broadcast %75 : vector<8x1xf32> to vector<8x256xf32>
    %77 = arith.mulf %74, %76 : vector<8x256xf32>
    %c0_21 = arith.constant 0 : index
    %c0_22 = arith.constant 0 : index
    %78 = vector.load %arg6[%c0_21, %c0_22] : memref<8x1xf32, #tpu.memory_space<vmem>>, vector<8x1xf32>
    %79 = vector.broadcast %78 : vector<8x1xf32> to vector<8x256xf32>
    %80 = arith.addf %77, %79 : vector<8x256xf32>
    %cst_23 = arith.constant 0.000000e+00 : f32
    %81 = vector.broadcast %cst_23 : f32 to vector<8x256xf32>
    %82 = arith.maximumf %80, %81 : vector<8x256xf32>
    %cst_24 = arith.constant 0.000000e+00 : f32
    %83 = vector.broadcast %cst_24 : f32 to vector<8x17xf32>
    %84 = tpu.concatenate %83, %82, %83 in 1 : vector<8x17xf32>, vector<8x256xf32>, vector<8x17xf32> -> vector<8x290xf32>
    %85 = vector.extract_strided_slice %84 {offsets = [0, 0], sizes = [8, 256], strides = [1, 1]} : vector<8x290xf32> to vector<8x256xf32>
    %86 = vector.broadcast %27 : vector<1x256xf32> to vector<8x256xf32>
    %87 = arith.mulf %85, %86 : vector<8x256xf32>
    %88 = vector.extract_strided_slice %84 {offsets = [0, 1], sizes = [8, 256], strides = [1, 1]} : vector<8x290xf32> to vector<8x256xf32>
    %89 = vector.extract_strided_slice %84 {offsets = [0, 2], sizes = [8, 256], strides = [1, 1]} : vector<8x290xf32> to vector<8x256xf32>
    %90 = vector.broadcast %38 : vector<1x256xf32> to vector<8x256xf32>
    %91 = arith.mulf %89, %90 : vector<8x256xf32>
    %92 = vector.extract_strided_slice %84 {offsets = [0, 16], sizes = [8, 256], strides = [1, 1]} : vector<8x290xf32> to vector<8x256xf32>
    %93 = vector.broadcast %27 : vector<1x256xf32> to vector<8x256xf32>
    %94 = arith.mulf %92, %93 : vector<8x256xf32>
    %95 = vector.extract_strided_slice %84 {offsets = [0, 17], sizes = [8, 256], strides = [1, 1]} : vector<8x290xf32> to vector<8x256xf32>
    %96 = vector.extract_strided_slice %84 {offsets = [0, 18], sizes = [8, 256], strides = [1, 1]} : vector<8x290xf32> to vector<8x256xf32>
    %97 = vector.broadcast %38 : vector<1x256xf32> to vector<8x256xf32>
    %98 = arith.mulf %96, %97 : vector<8x256xf32>
    %99 = vector.extract_strided_slice %84 {offsets = [0, 32], sizes = [8, 256], strides = [1, 1]} : vector<8x290xf32> to vector<8x256xf32>
    %100 = vector.broadcast %27 : vector<1x256xf32> to vector<8x256xf32>
    %101 = arith.mulf %99, %100 : vector<8x256xf32>
    %102 = vector.extract_strided_slice %84 {offsets = [0, 33], sizes = [8, 256], strides = [1, 1]} : vector<8x290xf32> to vector<8x256xf32>
    %103 = vector.extract_strided_slice %84 {offsets = [0, 34], sizes = [8, 256], strides = [1, 1]} : vector<8x290xf32> to vector<8x256xf32>
    %104 = vector.broadcast %38 : vector<1x256xf32> to vector<8x256xf32>
    %105 = arith.mulf %103, %104 : vector<8x256xf32>
    %106 = tpu.concatenate %87, %88, %91, %94, %95, %98, %101, %102, %105 in 0 : vector<8x256xf32>, vector<8x256xf32>, vector<8x256xf32>, vector<8x256xf32>, vector<8x256xf32>, vector<8x256xf32>, vector<8x256xf32>, vector<8x256xf32>, vector<8x256xf32> -> vector<72x256xf32>
    %107 = arith.truncf %106 : vector<72x256xf32> to vector<72x256xbf16>
    %c0_25 = arith.constant 0 : index
    %c0_26 = arith.constant 0 : index
    %108 = vector.load %arg7[%c0_25, %c0_26] : memref<8x72xbf16, #tpu.memory_space<vmem>>, vector<8x72xbf16>
    %cst_27 = arith.constant dense<0.000000e+00> : vector<8x256xf32>
    %109 = tpu.matmul %108, %107, %cst_27 {dimension_numbers = #tpu.dot_dimension_numbers<[1], [0], [0], [1], [0, 0, 1, 1], [], []>} : vector<8x72xbf16>, vector<72x256xbf16>, vector<8x256xf32> -> vector<8x256xf32>
    %c0_28 = arith.constant 0 : index
    %c0_29 = arith.constant 0 : index
    %110 = vector.load %arg8[%c0_28, %c0_29] : memref<8x1xf32, #tpu.memory_space<vmem>>, vector<8x1xf32>
    %111 = vector.broadcast %110 : vector<8x1xf32> to vector<8x256xf32>
    %112 = arith.addf %109, %111 : vector<8x256xf32>
    %113 = arith.index_cast %c0_i32_10 : i32 to index
    %c0_30 = arith.constant 0 : index
    %c0_31 = arith.constant 0 : index
    %114 = vector.load %arg1[%113, %c0_30, %c0_31] : memref<1x8x256xf32, #tpu.memory_space<vmem>>, vector<1x8x256xf32>
    %115 = vector.shape_cast %114 : vector<1x8x256xf32> to vector<8x256xf32>
    %116 = arith.addf %115, %112 : vector<8x256xf32>
    %117 = arith.index_cast %c0_i32_10 : i32 to index
    %c0_32 = arith.constant 0 : index
    %c0_33 = arith.constant 0 : index
    %118 = vector.load %arg9[%117, %c0_32, %c0_33] : memref<1x8x256xf32, #tpu.memory_space<vmem>>, vector<1x8x256xf32>
    %119 = vector.shape_cast %118 : vector<1x8x256xf32> to vector<8x256xf32>
    %120 = vector.shape_cast %116 : vector<8x256xf32> to vector<1x8x256xf32>
    tpu.vector_store %arg9[%117, %c0_32, %c0_33], %120 {strides = array<i32>} : memref<1x8x256xf32, #tpu.memory_space<vmem>>, vector<1x8x256xf32>,
    %c1_i32_34 = arith.constant 1 : i32
    return
  }
  func.func @transform_0(%arg0: i32) -> (i32, i32, i32) {
    %c0_i32 = arith.constant 0 : i32
    %c0_i32_0 = arith.constant 0 : i32
    %c0_i32_1 = arith.constant 0 : i32
    return %arg0, %c0_i32, %c0_i32_0 : i32, i32, i32
  }
  func.func @transform_1(%arg0: i32) -> (i32, i32) {
    %c0_i32 = arith.constant 0 : i32
    %c0_i32_0 = arith.constant 0 : i32
    %c0_i32_1 = arith.constant 0 : i32
    return %c0_i32, %c0_i32_0 : i32, i32
  }
  func.func @transform_2(%arg0: i32) -> (i32, i32) {
    %c0_i32 = arith.constant 0 : i32
    %c0_i32_0 = arith.constant 0 : i32
    %c0_i32_1 = arith.constant 0 : i32
    return %c0_i32, %c0_i32_0 : i32, i32
  }
  func.func @transform_3(%arg0: i32) -> (i32, i32) {
    %c0_i32 = arith.constant 0 : i32
    %c0_i32_0 = arith.constant 0 : i32
    %c0_i32_1 = arith.constant 0 : i32
    return %c0_i32, %c0_i32_0 : i32, i32
  }
  func.func @transform_4(%arg0: i32) -> (i32, i32) {
    %c0_i32 = arith.constant 0 : i32
    %c0_i32_0 = arith.constant 0 : i32
    %c0_i32_1 = arith.constant 0 : i32
    return %c0_i32, %c0_i32_0 : i32, i32
  }
  func.func @transform_5(%arg0: i32) -> (i32, i32) {
    %c0_i32 = arith.constant 0 : i32
    %c0_i32_0 = arith.constant 0 : i32
    %c0_i32_1 = arith.constant 0 : i32
    return %c0_i32, %c0_i32_0 : i32, i32
  }
  func.func @transform_6(%arg0: i32) -> (i32, i32) {
    %c0_i32 = arith.constant 0 : i32
    %c0_i32_0 = arith.constant 0 : i32
    %c0_i32_1 = arith.constant 0 : i32
    return %c0_i32, %c0_i32_0 : i32, i32
  }
  func.func @transform_7(%arg0: i32) -> (i32, i32) {
    %c0_i32 = arith.constant 0 : i32
    %c0_i32_0 = arith.constant 0 : i32
    %c0_i32_1 = arith.constant 0 : i32
    return %c0_i32, %c0_i32_0 : i32, i32
  }
  func.func @transform_8(%arg0: i32) -> (i32, i32, i32) {
    %c0_i32 = arith.constant 0 : i32
    %c0_i32_0 = arith.constant 0 : i32
    %c0_i32_1 = arith.constant 0 : i32
    return %arg0, %c0_i32, %c0_i32_0 : i32, i32, i32
  }
}

</mosaic_0001>

<bundles_post_ra>
// kernel: tpu_custom_call.1
= control target key start
LH: loop header
LB: loop body
LE: loop exit
PB: predicated region body
PF: predicated region fallthrough
CT: control target
= control target key end

     0   :  { %13 = vsyncpa [#allocation3], 0  ;;  %s2295_s0 = inlined_call_operand.hbm [shape: f32[2,8,256], index: 0, kind: input, shape index: {}]   ;;  %s2296_s1 = inlined_call_operand.hbm [shape: f32[8,1], index: 1, kind: input, shape index: {}]   ;;  %s2297_s2 = inlined_call_operand.hbm [shape: f32[8,1], index: 2, kind: input, shape index: {}]   ;;  %s2298_s3 = inlined_call_operand.hbm [shape: bf16[8,72], index: 3, kind: input, shape index: {}]   ;;  %s2299_s4 = inlined_call_operand.hbm [shape: f32[8,1], index: 4, kind: input, shape index: {}]   ;;  %s2300_s5 = inlined_call_operand.hbm [shape: f32[8,1], index: 5, kind: input, shape index: {}]   ;;  %s2301_s6 = inlined_call_operand.hbm [shape: bf16[8,72], index: 6, kind: input, shape index: {}]   ;;  %s2302_s7 = inlined_call_operand.hbm [shape: f32[8,1], index: 7, kind: input, shape index: {}]   ;;  %s2303_s8 = inlined_call_operand.hbm [shape: f32[2,8,256], index: 8, kind: output, shape index: {}]  }
   0x1   :  { %15 = vsyncpa [#allocation3 + $0x1], 0 }
   0x2   :  { %16 = vsyncpa [#allocation6], 0 }
   0x3   :  { %17 = vsyncpa [#allocation9], 0 }
   0x4   :  { %18 = vsyncpa [#allocation12], 0 }
   0x5   :  { %19 = vsyncpa [#allocation15], 0 }
   0x6   :  { %20 = vsyncpa [#allocation4], 0 }
   0x7   :  { %22 = vsyncpa [#allocation4 + $0x1], 0  ;;  %s1752_s27 = smov 0   ;;  %s1754_s28 = smov 0  }
   0x8   :  { %s1756_s29 = smov 0   ;;  %s1758_s30 = smov 0  }
   0x9 LB: > { %s1682_s9 = smov [#allocation5]   ;;  %s1773_s11 = sadd.s32 4294967295, %s1680_s30   ;;  %s1680_s30 = sphi %s1758_s30, %s2330_s30   ;;  %s1676_s29 = sphi %s1756_s29, %s2329_s29   ;;  %s1672_s28 = sphi %s1754_s28, %s2328_s28   ;;  %s1668_s27 = sphi %s1752_s27, %s2327_s27  }
   0xa   : > { %s245_s10 = sshll.u32 %s1682_s9, 4  ;;  %p1095_p0 = scmp.ge.s32.totalorder %s1680_s30, 1  ;;  %s1778_s10 = int_to_ptr.vmem [resolvable:$true] %s245_s10 }
   0xb   : > { %p2304_p1 = scmp.eq.s32.totalorder %s1773_s11, 0  ;;  %p232_p2 = scmp.lt.s32.totalorder %s1680_s30, 3 }
   0xc   : > { %s1683_s13 = smov [#allocation8]   ;;  %s1684_s15 = smov [#allocation11]  }
   0xd   : > { %p1780_p3 = pnand %p1095_p0, %p232_p2  ;;  %s267_s14 = sshll.u32 %s1683_s13, 4  ;;  %s1787_s14 = int_to_ptr.vmem [resolvable:$true] %s267_s14 }
   0xe   : > { %s289_s16 = sshll.u32 %s1684_s15, 4  ;;  %s1685_s18 = smov [#allocation7]   ;;  %s1795_s16 = int_to_ptr.vmem [resolvable:$true] %s289_s16 }
   0xf   : > { %s2307_s12 = scalar_select %p1780_p3, 1, 0 }
  0x10   : > { %p1164_p5 = pneg %p1780_p3  ;;  %s1797_s19 = sshll.u32 %s1685_s18, 4  ;;  %s257_s19 = int_to_ptr.vmem [resolvable:$true] %s1797_s19 }
  0x11   : > { %s1372_s22 = scalar_lea.hbm %s2296_s1, 128 }
  0x12   : > { %p1791_p6 = pnand %p1164_p5, %p2304_p1  ;;  %p1373_p7 = scmp.ne.s32.totalorder %s2296_s1, %s1372_s22 }
  0x13   : > { %p1379_p11 = scmp.lt.u32.totalorder %s1372_s22, %s2296_s1 }
  0x14   : > { %p1807_p8 = pneg %p1791_p6 }
  0x16   : > { %p1375_p9 = pnand %p1807_p8, %p1373_p7 }
  0x18   : > { %p1376_p10 = pneg %p1375_p9 }
  0x1a   : > { %p1381_p12 = pnand %p1379_p11, %p1376_p10 }
  0x1c   : > { %1384 = shalt.err (!%p1381_p12)
}
  0x1d   : > { %s1385_s13 = scalar_lea.vmem %s1778_s10, 128  ;;  %p1393_p5 = scmp.lt.s32.totalorder %s1778_s10, %s1778_s10 }
  0x1e   : > { %p1386_p13 = scmp.ne.s32.totalorder %s1778_s10, %s1385_s13  ;;  %p1394_p4 = scmp.lt.s32.totalorder %s1385_s13, %s1385_s13 }
  0x20   : > { %p1388_p0 = pnand %p1386_p13, %p1807_p8  ;;  %p1395_p7 = por %p1394_p4, %p1393_p5 }
  0x22   : > { %p1389_p2 = pneg %p1388_p0 }
  0x24   : > { %p1396_p9 = pnand %p1395_p7, %p1389_p2 }
  0x26   : > { %1399 = shalt.err (!%p1396_p9)
}
  0x27   : > { %1167 = dma.hbm_to_vmem [thread:$0]  (!%p1791_p6), %s2296_s1, 128, %s1778_s10, [#allocation6]  }
  0x28   : > { %s1400_s22 = scalar_lea.hbm %s2298_s3, 64 }
  0x29   : > { %p1401_p10 = scmp.ne.s32.totalorder %s2298_s3, %s1400_s22  ;;  %p1407_p12 = scmp.lt.u32.totalorder %s1400_s22, %s2298_s3 }
  0x2b   : > { %p1403_p4 = pnand %p1401_p10, %p1807_p8 }
  0x2d   : > { %p1404_p11 = pneg %p1403_p4 }
  0x2f   : > { %p1409_p13 = pnand %p1407_p12, %p1404_p11 }
  0x31   : > { %1412 = shalt.err (!%p1409_p13)
}
  0x32   : > { %s1413_s10 = scalar_lea.vmem %s1787_s14, 64  ;;  %p1421_p7 = scmp.lt.s32.totalorder %s1787_s14, %s1787_s14 }
  0x33   : > { %p1414_p0 = scmp.ne.s32.totalorder %s1787_s14, %s1413_s10  ;;  %p1422_p9 = scmp.lt.s32.totalorder %s1413_s10, %s1413_s10 }
  0x35   : > { %p1416_p2 = pnand %p1414_p0, %p1807_p8  ;;  %p1423_p10 = por %p1422_p9, %p1421_p7 }
  0x37   : > { %p1417_p5 = pneg %p1416_p2 }
  0x39   : > { %p1424_p4 = pnand %p1423_p10, %p1417_p5 }
  0x3b   : > { %1427 = shalt.err (!%p1424_p4)
}
  0x3c   : > { %1173 = dma.hbm_to_vmem [thread:$0]  (!%p1791_p6), %s2298_s3, 64, %s1787_s14, [#allocation9]  }
  0x3d   : > { %s1428_s21 = scalar_lea.hbm %s2300_s5, 128 }
  0x3e   : > { %p1429_p11 = scmp.ne.s32.totalorder %s2300_s5, %s1428_s21  ;;  %p1435_p0 = scmp.lt.u32.totalorder %s1428_s21, %s2300_s5 }
  0x40   : > { %p1431_p12 = pnand %p1429_p11, %p1807_p8 }
  0x42   : > { %p1432_p13 = pneg %p1431_p12 }
  0x44   : > { %p1437_p2 = pnand %p1435_p0, %p1432_p13 }
  0x46   : > { %1440 = shalt.err (!%p1437_p2)
}
  0x47   : > { %s1441_s14 = scalar_lea.vmem %s1795_s16, 128  ;;  %p1449_p10 = scmp.lt.s32.totalorder %s1795_s16, %s1795_s16 }
  0x48   : > { %p1442_p5 = scmp.ne.s32.totalorder %s1795_s16, %s1441_s14  ;;  %p1450_p4 = scmp.lt.s32.totalorder %s1441_s14, %s1441_s14 }
  0x4a   : > { %p1444_p7 = pnand %p1442_p5, %p1807_p8  ;;  %p1451_p11 = por %p1450_p4, %p1449_p10 }
  0x4c   : > { %p1445_p9 = pneg %p1444_p7 }
  0x4e   : > { %p1452_p12 = pnand %p1451_p11, %p1445_p9 }
  0x50   : > { %1455 = shalt.err (!%p1452_p12)
}
  0x51   : > { %1179 = dma.hbm_to_vmem [thread:$0]  (!%p1791_p6), %s2300_s5, 128, %s1795_s16, [#allocation12]  }
  0x52   : > { %s1686_s13 = smov [#allocation10]   ;;  %s1456_s21 = scalar_lea.hbm %s2297_s2, 128 }
  0x53   : > { %s278_s15 = sshll.u32 %s1686_s13, 4  ;;  %p1457_p13 = scmp.ne.s32.totalorder %s2297_s2, %s1456_s21  ;;  %s279_s15 = int_to_ptr.vmem [resolvable:$true] %s278_s15 }
  0x54   : > { %p1463_p5 = scmp.lt.u32.totalorder %s1456_s21, %s2297_s2 }
  0x55   : > { %p1459_p0 = pnand %p1457_p13, %p1807_p8 }
  0x57   : > { %p1460_p2 = pneg %p1459_p0 }
  0x59   : > { %p1465_p7 = pnand %p1463_p5, %p1460_p2 }
  0x5b   : > { %1468 = shalt.err (!%p1465_p7)
}
  0x5c   : > { %s1469_s16 = scalar_lea.vmem %s257_s19, 128  ;;  %p1477_p11 = scmp.lt.s32.totalorder %s257_s19, %s257_s19 }
  0x5d   : > { %p1470_p9 = scmp.ne.s32.totalorder %s257_s19, %s1469_s16  ;;  %p1478_p12 = scmp.lt.s32.totalorder %s1469_s16, %s1469_s16 }
  0x5f   : > { %p1472_p10 = pnand %p1470_p9, %p1807_p8  ;;  %p1479_p1 = por %p1478_p12, %p1477_p11 }
  0x61   : > { %p1473_p4 = pneg %p1472_p10 }
  0x63   : > { %p1480_p3 = pnand %p1479_p1, %p1473_p4 }
  0x65   : > { %1483 = shalt.err (!%p1480_p3)
}
  0x66   : > { %1170 = dma.hbm_to_vmem [thread:$0]  (!%p1791_p6), %s2297_s2, 128, %s257_s19, [#allocation6]  }
  0x67   : > { %s1484_s18 = scalar_lea.hbm %s2299_s4, 128 }
  0x68   : > { %p1485_p13 = scmp.ne.s32.totalorder %s2299_s4, %s1484_s18  ;;  %p1491_p3 = scmp.lt.u32.totalorder %s1484_s18, %s2299_s4 }
  0x6a   : > { %p1487_p0 = pnand %p1485_p13, %p1807_p8 }
  0x6c   : > { %p1488_p1 = pneg %p1487_p0 }
  0x6e   : > { %p1493_p2 = pnand %p1491_p3, %p1488_p1 }
  0x70   : > { %1496 = shalt.err (!%p1493_p2)
}
  0x71   : > { %s1497_s24 = scalar_lea.vmem %s279_s15, 128  ;;  %p1505_p10 = scmp.lt.s32.totalorder %s279_s15, %s279_s15 }
  0x72   : > { %p1498_p5 = scmp.ne.s32.totalorder %s279_s15, %s1497_s24  ;;  %p1506_p4 = scmp.lt.s32.totalorder %s1497_s24, %s1497_s24 }
  0x74   : > { %p1500_p7 = pnand %p1498_p5, %p1807_p8  ;;  %p1507_p11 = por %p1506_p4, %p1505_p10 }
  0x76   : > { %p1501_p9 = pneg %p1500_p7 }
  0x78   : > { %p1508_p12 = pnand %p1507_p11, %p1501_p9 }
  0x7a   : > { %1511 = shalt.err (!%p1508_p12)
}
  0x7b   : > { %1176 = dma.hbm_to_vmem [thread:$0]  (!%p1791_p6), %s2299_s4, 128, %s279_s15, [#allocation9]  }
  0x7c   : > { %s1687_s16 = smov [#allocation13]   ;;  %s1688_s9 = smov [#allocation14]  }
  0x7d   : > { %s300_s14 = sshll.u32 %s1687_s16, 4  ;;  %s311_s10 = sshll.u32 %s1688_s9, 4  ;;  %s301_s14 = int_to_ptr.vmem [resolvable:$true] %s300_s14  ;;  %s312_s10 = int_to_ptr.vmem [resolvable:$true] %s311_s10 }
  0x7e   : > { %s1512_s20 = scalar_lea.hbm %s2301_s6, 64 }
  0x7f   : > { %p1513_p13 = scmp.ne.s32.totalorder %s2301_s6, %s1512_s20  ;;  %p1519_p3 = scmp.lt.u32.totalorder %s1512_s20, %s2301_s6 }
  0x81   : > { %p1515_p0 = pnand %p1513_p13, %p1807_p8 }
  0x83   : > { %p1516_p1 = pneg %p1515_p0 }
  0x85   : > { %p1521_p2 = pnand %p1519_p3, %p1516_p1 }
  0x87   : > { %1524 = shalt.err (!%p1521_p2)
}
  0x88   : > { %s1525_s15 = scalar_lea.vmem %s301_s14, 64  ;;  %p1533_p10 = scmp.lt.s32.totalorder %s301_s14, %s301_s14 }
  0x89   : > { %p1526_p5 = scmp.ne.s32.totalorder %s301_s14, %s1525_s15  ;;  %p1534_p4 = scmp.lt.s32.totalorder %s1525_s15, %s1525_s15 }
  0x8b   : > { %p1528_p7 = pnand %p1526_p5, %p1807_p8  ;;  %p1535_p11 = por %p1534_p4, %p1533_p10 }
  0x8d   : > { %p1529_p9 = pneg %p1528_p7 }
  0x8f   : > { %p1536_p12 = pnand %p1535_p11, %p1529_p9 }
  0x91   : > { %1539 = shalt.err (!%p1536_p12)
}
  0x92   : > { %1182 = dma.hbm_to_vmem [thread:$0]  (!%p1791_p6), %s2301_s6, 64, %s301_s14, [#allocation12]  }
  0x93   : > { %s1540_s13 = scalar_lea.hbm %s2302_s7, 128 }
  0x94   : > { %p1541_p13 = scmp.ne.s32.totalorder %s2302_s7, %s1540_s13  ;;  %p1547_p3 = scmp.lt.u32.totalorder %s1540_s13, %s2302_s7 }
  0x96   : > { %p1543_p0 = pnand %p1541_p13, %p1807_p8 }
  0x98   : > { %p1544_p1 = pneg %p1543_p0 }
  0x9a   : > { %p1549_p2 = pnand %p1547_p3, %p1544_p1 }
  0x9c   : > { %1552 = shalt.err (!%p1549_p2)
}
  0x9d   : > { %s1553_s23 = scalar_lea.vmem %s312_s10, 128  ;;  %p1561_p10 = scmp.lt.s32.totalorder %s312_s10, %s312_s10 }
  0x9e   : > { %p1554_p5 = scmp.ne.s32.totalorder %s312_s10, %s1553_s23  ;;  %p1562_p4 = scmp.lt.s32.totalorder %s1553_s23, %s1553_s23 }
  0xa0   : > { %p1556_p7 = pnand %p1554_p5, %p1807_p8  ;;  %p1563_p11 = por %p1562_p4, %p1561_p10 }
  0xa2   : > { %p1557_p9 = pneg %p1556_p7 }
  0xa4   : > { %p1564_p12 = pnand %p1563_p11, %p1557_p9 }
  0xa6   : > { %1567 = shalt.err (!%p1564_p12)
}
  0xa7   : > { %1185 = dma.hbm_to_vmem [thread:$0]  (!%p1791_p6), %s2302_s7, 128, %s312_s10, [#allocation15]  }
  0xa8   : > { %s1094_s25 = sadd.s32 4294967294, %s1680_s30   ;;  %s1949_s17 = sadd.s32 1, %s1680_s30  }
  0xa9   : > { %s35_s15 = sadd.s32 1, %s1676_s29  ;;  %s32_s19 = ssub.s32 %s1680_s30, %s1949_s17 }
  0xaa   : > { %p42_p8 = scmp.ne.s32.totalorder %s1676_s29, %s1672_s28  ;;  %p33_p13 = scmp.eq.s32.totalorder %s32_s19, 0 }
  0xab   : > { %p43_p0 = scmp.eq.s32.totalorder %s1680_s30, 0  ;;  %p48_p1 = scmp.ne.s32.totalorder %s1672_s28, %s1668_s27 }
  0xac   : > { %p219_p3 = scmp.eq.s32.totalorder %s1773_s11, 1  ;;  %p2310_p5 = scmp.eq.s32.totalorder %s1773_s11, 0 }
  0xad   : > { %s1961_s26 = scalar_select %p33_p13, %s1676_s29, %s35_s15  }
  0xae   : > { %p44_p2 = por %p43_p0, %p42_p8  ;;  %p1965_p7 = por %p2310_p5, %p48_p1 }
  0xaf   : > { %p1969_p6 = por %p219_p3, %p42_p8  ;;  %p225_p9 = scmp.eq.s32.totalorder %s1094_s25, 1 }
  0xb0   : > { %p1201_p10 = scmp.lt.s32.totalorder %s1680_s30, 2  ;;  %s322_s9 = sand.u32 1, %s1676_s29  }
  0xb1   : > { %s2312_s10 = scalar_select %p1969_p6, 1, 0 }
  0xb2   : > { %p1975_p4 = por %p225_p9, %p48_p1  ;;  %s1104_s18 = sshll.u32 %s322_s9, 4 }
  0xb3   : > { %s1130_s20 = sshll.u32 %s1680_s30, 8  ;;  %s326_s14 = scalar_lea.vmem [#allocation2], %s1104_s18 }
  0xb4   : > { %s2313_s13 = scalar_select %p1975_p4, 1, 0 }
  0xb5   : > { %s1983_s23 = scalar_lea.hbm %s2295_s0, %s1130_s20  ;;  %s334_s24 = sshll.u32 %s326_s14, 4  ;;  %s1989_s24 = int_to_ptr.vmem [resolvable:$true] %s334_s24 }
  0xb6   : > { %p1985_p11 = pnand %p1201_p10, %p44_p2  ;;  %s323_s15 = scalar_lea.sflag [#allocation3], %s322_s9 }
  0xb7   : > { %s1568_s19 = scalar_lea.hbm %s1983_s23, 256  ;;  %s1573_s21 = scalar_lea.hbm %s2295_s0, 512 }
  0xb8   : > { %p1569_p12 = scmp.ne.s32.totalorder %s1983_s23, %s1568_s19  ;;  %p1570_p8 = pneg %p1985_p11 }
  0xb9   : > { %p1574_p1 = scmp.lt.u32.totalorder %s1983_s23, %s2295_s0  ;;  %p1575_p3 = scmp.lt.u32.totalorder %s1573_s21, %s1568_s19 }
  0xba   : > { %p1571_p13 = pnand %p1570_p8, %p1569_p12  ;;  %p1577_p5 = scmp.lt.u32.totalorder %s1568_s19, %s1983_s23 }
  0xbb   : > { %p1576_p2 = por %p1575_p3, %p1574_p1 }
  0xbc   : > { %p1572_p0 = pneg %p1571_p13 }
  0xbd   : > { %p1578_p9 = por %p1577_p5, %p1576_p2 }
  0xbf   : > { %p1579_p10 = pnand %p1578_p9, %p1572_p0 }
  0xc1   : > { %1582 = shalt.err (!%p1579_p10)
}
  0xc2   : > { %s1583_s9 = scalar_lea.vmem %s1989_s24, 256  ;;  %s1689_s20 = smov [#allocation2]  }
  0xc3   : > { %p1584_p12 = scmp.ne.s32.totalorder %s1989_s24, %s1583_s9  ;;  %s1588_s18 = sshll.u32 %s1689_s20, 4  ;;  %s1589_s18 = int_to_ptr.vmem [resolvable:$false] %s1588_s18 }
  0xc4   : > { %s1590_s22 = scalar_lea.vmem %s1589_s18, 512  ;;  %p1591_p6 = scmp.lt.s32.totalorder %s1989_s24, %s1589_s18 }
  0xc5   : > { %p1586_p13 = pnand %p1584_p12, %p1570_p8  ;;  %p1592_p1 = scmp.lt.s32.totalorder %s1590_s22, %s1583_s9 }
  0xc7   : > { %p1587_p4 = pneg %p1586_p13  ;;  %p1593_p3 = por %p1592_p1, %p1591_p6 }
  0xc9   : > { %p1594_p2 = pnand %p1593_p3, %p1587_p4 }
  0xcb   : > { %1597 = shalt.err (!%p1594_p2)
}
  0xcc   : > { %1189 = dma.hbm_to_vmem [thread:$0]  (!%p1985_p11), %s1983_s23, 256, %s1989_s24, %s323_s15  }
  0xcd   : > { %p2315_p0 = scmp.ne.s32.totalorder %s2307_s12, 0 }
  0xce   : > { %s2019_s19 = sand.u32 (!%p2315_p0), 1, %s1672_s28  }
  0xcf   : > { %343 = sbr.rel (%p2315_p0) target bundleno = 1356 (0x54c), region = 52  ;;  %s1108_s21 = sshll.u32 (!%p2315_p0), %s2019_s19, 4 }
  0xd0   : > { %s346_s14 = scalar_lea.sflag (!%p2315_p0), [#allocation3], %s2019_s19  ;;  %s2025_s9 = scalar_lea.vmem (!%p2315_p0), [#allocation2], %s1108_s21 }
  0xd6   : > { %1643 = dma.done.wait (%p1965_p7), %s346_s14, 256  }
  0xd7   : > { %1645 = vsyncadd (%p1965_p7), %s346_s14, 4294967040  ;;  %p2316_p6 = scmp.eq.s32.totalorder %s1773_s11, 0 }
  0xd9   : > { %1647 = dma.done.wait (%p2316_p6), [#allocation6], 256   ;;  %p2317_p4 = pmov %p2316_p6 }
  0xdb   : > { %1649 = vsyncadd (%p2317_p4), [#allocation6], 4294967040  ;;  %p2318_p11 = pmov %p2317_p4 }
  0xdc   : > { %p2319_p8 = pmov %p2317_p4 }
  0xdd   : > { %1651 = dma.done.wait (%p2318_p11), [#allocation9], 192  }
  0xde   : > { %1653 = vsyncadd (%p2319_p8), [#allocation9], 4294967104  ;;  %p2320_p5 = pmov %p2317_p4 }
  0xdf   : > { %p2321_p9 = pmov %p2317_p4 }
  0xe0   : > { %1655 = dma.done.wait (%p2320_p5), [#allocation12], 192  }
  0xe1   : > { %1657 = vsyncadd (%p2321_p9), [#allocation12], 4294967104  ;;  %p2322_p7 = pmov %p2317_p4 }
  0xe2   : > { %p2323_p10 = pmov %p2317_p4 }
  0xe3   : > { %1659 = dma.done.wait (%p2322_p7), [#allocation15], 128  }
  0xe4   : > { %1661 = vsyncadd (%p2323_p10), [#allocation15], 4294967168  ;;  %v411_v0 = vlaneseq  ;;  %v1690_v1 = vmov 0   ;;  %v464_v7 = vld [vmem:[#allocation5] sm:$0xff]  ;;  %v472_v9 = vld [vmem:[#allocation7] sm:$0xff]  ;;  %v1691_v10 = vmov 0.0  }
  0xe5   : > { %1265 = vset.pattern.permute.xlu0 %v1690_v1  ;;  %718 = vmatprep.mubr.bf16.mxu0 %v1690_v1  ;;  %s1692_s12 = smov 2   ;;  %s1693_s16 = smov 18   ;;  %v2052_v19 = vld [vmem:[%s2025_s9] sm:$0xff]  ;;  %v2056_v21 = vld [vmem:[%s2025_s9 + $0x8] sm:$0xff]  ;;  %vm486_vm4 = vcmask 138240   ;;  %vm501_vm5 = vcmask 15360  }
  0xe6   : > { %v412_v2 = vand.u32 127, %v411_v0  ;;  %1331 = vset.pattern.permute.xlu1 %v1690_v1  ;;  %929 = vmatprep.mubr.bf16.mxu1 %v1690_v1  ;;  %s1694_s23 = smov 34   ;;  %s1695_s24 = smov 17   ;;  %vm515_vm6 = vcmask 130048   ;;  %vm527_vm7 = vcmask 146432   ;;  %vm539_vm8 = vcmask 261120  }
  0xe7   : > { %467 = vperm.xlu0 %1265, %v464_v7   ;;  %s1696_s25 = smov 16   ;;  %s1697_s15 = smov 32   ;;  %vm551_vm9 = vcmask 277504   ;;  %vm567_vm10 = vcmask 1039360   ;;  %vm595_vm11 = vcmask 916480   ;;  %vm581_vm12 = vcmask 1031168  }
  0xe8   : > { %v413_v3 = vadd.s32 128, %v412_v2  ;;  %v418_v4 = vand.u32 15, %v412_v2  ;;  %s1698_s20 = smov 127   ;;  %s1699_s18 = smov 95   ;;  %vm606_vm13 = vcmask 908288   ;;  %vm620_vm14 = vcmask 900096  }
  0xe9   : > { %s1700_s22 = smov 111   ;;  %s1701_s14 = smov 112   ;;  %vm634_vm15 = vcmask 785408  }
  0xea   : > { %v425_v5 = vand.u32 15, %v413_v3  ;;  %v450_v6 = vadd.s32 1, %v418_v4  ;;  %v438_v14 = vadd.s32 4294967295, %v418_v4  ;;  %s1702_s9 = smov 126   ;;  %p2324_p13 = scmp.ne.s32.totalorder %s2312_s10, 0 }
  0xeb   : > { %475 = vperm.xlu0 %1265, %v472_v9   ;;  %v735_v9 = vld [vmem:[#allocation11] sm:$0xff] }
  0xec   : > { %v451_v8 = vadd.s32 1, %v425_v5  ;;  %vm454_vm0 = vcmp.lt.s32.totalorder %v450_v6, 16  ;;  %v439_v15 = vadd.s32 4294967295, %v425_v5  ;;  %vm440_vm2 = vcmp.ge.s32.totalorder %v438_v14, 0 }
  0xed   : > { %v1119_v11 = vsel %vm454_vm0, 1.0, %v1691_v10  ;;  %v2047_v16 = vsel %vm440_vm2, 1.0, %v1691_v10  ;;  %vm645_vm0 = vcmask 777216   ;;  %vm679_vm2 = vcmask 1043456  }
  0xee   : > { %vm455_vm1 = vcmp.lt.s32.totalorder %v451_v8, 16  ;;  %vm441_vm3 = vcmp.ge.s32.totalorder %v439_v15, 0 }
  0xef   : > { %v1120_v12 = vsel %vm455_vm1, 1.0, %v1691_v10  ;;  %v2049_v17 = vsel %vm441_vm3, 1.0, %v1691_v10  ;;  %v727_v10 = vld [vmem:[#allocation10] sm:$0xff]  ;;  %vm659_vm1 = vcmask 769024   ;;  %vm675_vm3 = vcmask 588800  }
  0xf0   : > { %v1266_v13 = vpack.i.bf16 %v1120_v12, %v1119_v11  ;;  %v1271_v26 = vpack.i.bf16 %v2049_v17, %v2047_v16 }
  0xf2   : > { %1267 = vrot.lane.b32.xlu0 %v1266_v13, %s1692_s12  ;;  %s1703_s12 = smov 110  }
  0xf6   : > { %1277 = vrot.lane.b32.xlu0 %v1266_v13, %s1693_s16  ;;  %s1704_s16 = smov 96  }
  0xfa   : > { %1287 = vrot.lane.b32.xlu0 %v1266_v13, %s1694_s23  ;;  %s1705_s23 = smov 94  }
 0x166   : > { %v468_v18 = vpop.permute.xlu0 %467 }
 0x167   : > { %v470_v20 = vmul.f32 %v468_v18, %v2052_v19  ;;  %v471_v24 = vmul.f32 %v468_v18, %v2056_v21 }
 0x16a   : > { %v476_v22 = vpop.permute.xlu0 %475 }
 0x16b   : > { %v478_v23 = vadd.f32 %v476_v22, %v470_v20  ;;  %v479_v25 = vadd.f32 %v476_v22, %v471_v24 }
 0x16d   : > { %482 = vrot.lane.b32.xlu1 %v478_v23, %s1695_s24 }
 0x16e   : > { %v1268_v29 = vpop.permute.xlu0 %1267 }
 0x16f   : > { %v2076_v34 = vunpack.i.h.bf16 %v1268_v29  ;;  %v2080_v36 = vunpack.i.l.bf16 %v1268_v29 }
 0x171   : > { %484 = vrot.lane.b32.xlu1 %v479_v25, %s1695_s24  ;;  %v2088_v40 = vsel %vm501_vm5, %v2080_v36, %v2076_v34 }
 0x172   : > { %v1278_v39 = vpop.permute.xlu0 %1277 }
 0x173   : > { %v2090_v41 = vunpack.i.h.bf16 %v1278_v39  ;;  %v2101_v46 = vunpack.i.l.bf16 %v1278_v39 }
 0x175   : > { %1272 = vrot.lane.b32.xlu1 %v1271_v26, %s1696_s25  ;;  %v2109_v50 = vsel %vm527_vm7, %v2101_v46, %v2090_v41  ;;  %s409_s25 = scalar_lea.vmem [#allocation16], %s1108_s21 }
 0x176   : > { %v1288_v58 = vpop.permute.xlu0 %1287 }
 0x177   : > { %v2136_v63 = vunpack.i.h.bf16 %v1288_v58  ;;  %v2140_v0 = vunpack.i.l.bf16 %v1288_v58 }
 0x179   : > { %1282 = vrot.lane.b32.xlu1 %v1271_v26, %s1697_s15  ;;  %v2146_v3 = vsel %vm551_vm9, %v2140_v0, %v2136_v63  ;;  %s957_s15 = sshll.u32 %s409_s25, 4  ;;  %s2253_s15 = int_to_ptr.vmem [resolvable:$true] %s957_s15 }
 0x17a   : > { %s1598_s21 = scalar_lea.vmem %s2253_s15, 256 }
 0x17b   : > { %p1599_p12 = scmp.ne.s32.totalorder %s2253_s15, %s1598_s21 }
 0x17d   : > { %p1600_p1 = pnand %p1599_p12, %p2324_p13 }
 0x17f   : > { %p1601_p3 = pneg %p1600_p1 }
 0x1df   : > { %v483_v27 = vpop.permute.xlu1 %482 }
 0x1e0   : > { %v2064_v28 = vsel %vm486_vm4, 0.0, %v483_v27 }
 0x1e1   : > { %561 = vrot.lane.b32.xlu0 %v2064_v28, %s1698_s20  ;;  %v506_v59 = vmul.f32 %v2080_v36, %v2064_v28  ;;  %v532_v2 = vmul.f32 %v2101_v46, %v2064_v28  ;;  %v556_v6 = vmul.f32 %v2140_v0, %v2064_v28  ;;  %v493_v18 = vmul.f32 %v2047_v16, %v2064_v28 }
 0x1e3   : > { %v485_v30 = vpop.permute.xlu1 %484 }
 0x1e4   : > { %v2069_v31 = vsel %vm486_vm4, %v483_v27, %v485_v30  ;;  %v2072_v32 = vsel %vm486_vm4, %v485_v30, 0.0 }
 0x1e5   : > { %v1301_v33 = vpack.i.bf16 %v2072_v32, %v2069_v31  ;;  %v507_v48 = vmul.f32 %v2088_v40, %v2069_v31  ;;  %v508_v49 = vmul.f32 %v2076_v34, %v2072_v32  ;;  %v533_v55 = vmul.f32 %v2109_v50, %v2069_v31 }
 0x1e6   : > { %v534_v56 = vmul.f32 %v2090_v41, %v2072_v32  ;;  %v557_v5 = vmul.f32 %v2146_v3, %v2069_v31  ;;  %v558_v8 = vmul.f32 %v2136_v63, %v2072_v32  ;;  %v494_v15 = vmul.f32 %v2049_v17, %v2069_v31 }
 0x1e7   : > { %1302 = vrot.lane.b32.xlu0 %v1301_v33, %s1699_s18  ;;  %1292 = vrot.lane.b32.xlu1 %v1301_v33, %s1698_s20  ;;  %v1273_v35 = vpop.permute.xlu1 %1272  ;;  %v1306_v53 = vpack.i.bf16 %v508_v49, %v507_v48 }
 0x1e8   : > { %v2082_v37 = vunpack.i.h.bf16 %v1273_v35  ;;  %v2084_v38 = vunpack.i.l.bf16 %v1273_v35  ;;  %v1316_v60 = vpack.i.bf16 %v534_v56, %v533_v55  ;;  %v1326_v7 = vpack.i.bf16 %v557_v5, %v556_v6 }
 0x1ea   : > { %v2094_v42 = vsel %vm515_vm6, %v2084_v38, %v2082_v37  ;;  %v522_v43 = vmul.f32 %v2082_v37, %v2072_v32  ;;  %v520_v54 = vmul.f32 %v2084_v38, %v2064_v28 }
 0x1eb   : > { %1297 = vrot.lane.b32.xlu1 %v1301_v33, %s1700_s22  ;;  %v1283_v44 = vpop.permute.xlu1 %1282  ;;  %v521_v45 = vmul.f32 %v2094_v42, %v2069_v31 }
 0x1ec   : > { %v2111_v51 = vunpack.i.h.bf16 %v1283_v44  ;;  %v2113_v52 = vunpack.i.l.bf16 %v1283_v44 }
 0x1ed   : > { %v1311_v47 = vpack.i.bf16 %v522_v43, %v521_v45 }
 0x1ee   : > { %v2126_v57 = vsel %vm539_vm8, %v2113_v52, %v2111_v51  ;;  %v546_v62 = vmul.f32 %v2111_v51, %v2072_v32  ;;  %v544_v4 = vmul.f32 %v2113_v52, %v2064_v28 }
 0x1ef   : > { %600 = vrot.lane.b32.xlu1 %v2064_v28, %s1700_s22  ;;  %1312 = vrot.lane.b32.xlu0 %v1311_v47, %s1701_s14  ;;  %v545_v61 = vmul.f32 %v2126_v57, %v2069_v31 }
 0x1f1   : > { %v1321_v1 = vpack.i.bf16 %v546_v62, %v545_v61 }
 0x1f3   : > { %1307 = vrot.lane.b32.xlu1 %v1306_v53, %s1702_s9  ;;  %589 = vrot.lane.b32.xlu0 %v520_v54, %s1701_s14 }
 0x1f7   : > { %575 = vrot.lane.b32.xlu1 %v506_v59, %s1702_s9  ;;  %1317 = vrot.lane.b32.xlu0 %v1316_v60, %s1703_s12 }
 0x1fb   : > { %1322 = vrot.lane.b32.xlu1 %v1321_v1, %s1704_s16  ;;  %614 = vrot.lane.b32.xlu0 %v532_v2, %s1703_s12 }
 0x1ff   : > { %628 = vrot.lane.b32.xlu1 %v544_v4, %s1704_s16  ;;  %639 = vrot.lane.b32.xlu0 %v2064_v28, %s1699_s18 }
 0x203   : > { %1327 = vrot.lane.b32.xlu1 %v1326_v7, %s1705_s23  ;;  %657 = vrot.lane.b32.xlu0 %v558_v8, %s1705_s23 }
 0x207   : > { %738 = vperm.xlu0 %1265, %v735_v9   ;;  %730 = vperm.xlu1 %1331, %v727_v10  }
 0x253   : > { %v562_v11 = vpop.permute.xlu0 %561 }
 0x259   : > { %v1293_v12 = vpop.permute.xlu1 %1292  ;;  %v1303_v23 = vpop.permute.xlu0 %1302 }
 0x25a   : > { %v1295_v13 = vunpack.i.h.bf16 %v1293_v12  ;;  %v1294_v14 = vunpack.i.l.bf16 %v1293_v12  ;;  %v1305_v59 = vunpack.i.h.bf16 %v1303_v23  ;;  %v1304_v60 = vunpack.i.l.bf16 %v1303_v23 }
 0x25c   : > { %v569_v20 = vsel %vm567_vm10, %v1294_v14, %v1295_v13  ;;  %v568_v22 = vsel %vm567_vm10, %v562_v11, %v1294_v14  ;;  %v647_v11 = vsel %vm645_vm0, %v1304_v60, %v1305_v59 }
 0x25d   : > { %v1298_v24 = vpop.permute.xlu1 %1297  ;;  %v665_v25 = vpack.c.bf16 %v569_v20, %v494_v15  ;;  %v664_v26 = vpack.c.bf16 %v568_v22, %v493_v18 }
 0x25e   : > { %v1300_v39 = vunpack.i.h.bf16 %v1298_v24  ;;  %v1299_v43 = vunpack.i.l.bf16 %v1298_v24 }
 0x25f   : > { %686 = vmatprep.subr.bf16.mxu0 %v665_v25 }
 0x260   : > { %687 = vmatpush1.bf16.msra.mxu0 %v664_v26  ;;  %v608_v61 = vsel %vm606_vm13, %v1299_v43, %v1300_v39 }
 0x261   : > { %v601_v27 = vpop.permute.xlu1 %600  ;;  %v1313_v29 = vpop.permute.xlu0 %1312 }
 0x262   : > { %v1315_v30 = vunpack.i.h.bf16 %v1313_v29  ;;  %v1314_v32 = vunpack.i.l.bf16 %v1313_v29  ;;  %v607_v5 = vsel %vm606_vm13, %v601_v27, %v1299_v43 }
 0x264   : > { %v597_v45 = vsel %vm595_vm11, %v1314_v32, %v1315_v30 }
 0x265   : > { %v1308_v33 = vpop.permute.xlu1 %1307  ;;  %v590_v31 = vpop.permute.xlu0 %589 }
 0x266   : > { %v1310_v35 = vunpack.i.h.bf16 %v1308_v33  ;;  %v1309_v28 = vunpack.i.l.bf16 %v1308_v33  ;;  %v596_v53 = vsel %vm595_vm11, %v590_v31, %v1314_v32  ;;  %v674_v33 = vld [vmem:[#allocation8] sm:$0xf] }
 0x268   : > { %v583_v44 = vsel %vm581_vm12, %v1309_v28, %v1310_v35 }
 0x269   : > { %v576_v47 = vpop.permute.xlu1 %575  ;;  %v1318_v48 = vpop.permute.xlu0 %1317  ;;  %v667_v49 = vpack.c.bf16 %v597_v45, %v583_v44 }
 0x26a   : > { %v582_v54 = vsel %vm581_vm12, %v576_v47, %v1309_v28  ;;  %v1320_v55 = vunpack.i.h.bf16 %v1318_v48  ;;  %v1319_v56 = vunpack.i.l.bf16 %v1318_v48 }
 0x26b   : > { %v666_v58 = vpack.c.bf16 %v596_v53, %v582_v54  ;;  %688 = vmatprep.subr.bf16.mxu0 %v667_v49 }
 0x26c   : > { %v622_v62 = vsel %vm620_vm14, %v1319_v56, %v1320_v55 }
 0x26d   : > { %v1323_v1 = vpop.permute.xlu1 %1322  ;;  %v615_v2 = vpop.permute.xlu0 %614  ;;  %689 = vmatpush1.bf16.msra.mxu0 %v666_v58  ;;  %v669_v4 = vpack.c.bf16 %v622_v62, %v608_v61 }
 0x26e   : > { %v1325_v6 = vunpack.i.h.bf16 %v1323_v1  ;;  %v1324_v7 = vunpack.i.l.bf16 %v1323_v1  ;;  %v621_v8 = vsel %vm620_vm14, %v615_v2, %v1319_v56 }
 0x26f   : > { %v668_v9 = vpack.c.bf16 %v621_v8, %v607_v5  ;;  %690 = vmatprep.subr.bf16.mxu0 %v669_v4 }
 0x270   : > { %v636_v10 = vsel %vm634_vm15, %v1324_v7, %v1325_v6 }
 0x271   : > { %v629_v12 = vpop.permute.xlu1 %628  ;;  %v640_v13 = vpop.permute.xlu0 %639  ;;  %691 = vmatpush1.bf16.msra.mxu0 %v668_v9  ;;  %v671_v14 = vpack.c.bf16 %v647_v11, %v636_v10 }
 0x272   : > { %v635_v15 = vsel %vm634_vm15, %v629_v12, %v1324_v7  ;;  %v646_v18 = vsel %vm645_vm0, %v640_v13, %v1304_v60 }
 0x273   : > { %v670_v20 = vpack.c.bf16 %v646_v18, %v635_v15  ;;  %692 = vmatprep.subr.bf16.mxu0 %v671_v14 }
 0x275   : > { %v1328_v22 = vpop.permute.xlu1 %1327  ;;  %693 = vmatpush1.bf16.msra.mxu0 %v670_v20  ;;  %v658_v25 = vpop.permute.xlu0 %657 }
 0x276   : > { %v1330_v23 = vunpack.i.h.bf16 %v1328_v22  ;;  %v1329_v24 = vunpack.i.l.bf16 %v1328_v22 }
 0x278   : > { %v661_v26 = vsel %vm659_vm1, %v1330_v23, %v658_v25  ;;  %v660_v27 = vsel %vm659_vm1, %v1329_v24, %v1330_v23 }
 0x279   : > { %v673_v29 = vpack.c.bf16 %v661_v26, %v661_v26  ;;  %v672_v30 = vpack.c.bf16 %v660_v27, %v660_v27 }
 0x27b   : > { %1121 = vmatprep.subr.msk.bf16.mxu0 %vm679_vm2, %v673_v29  ;;  %v681_v32 = vsel %vm679_vm2, %v672_v30, 0 }
 0x27c   : > { %695 = vmatpush1.bf16.msra.mxu0 %v681_v32 }
 0x27f   : > { %1122 = vmatmul.mubr.msk.bf16.vlgmr.msra.gmra.mrb[0].mxu0 %vm675_vm3, %v674_v33 }
 0x286   : > { %v731_v31 = vpop.permute.xlu1 %730  ;;  %v739_v43 = vpop.permute.xlu0 %738 }
 0x352   : > { %v720_v35 = vpop.f32.mrb[0].mxu0 }
 0x353   : > { %v733_v28 = vmul.f32 %v731_v31, %v720_v35  ;;  %v722_v39 = vpop.f32.mrb[1].mxu0 }
 0x354   : > { %v734_v44 = vmul.f32 %v731_v31, %v722_v39  ;;  %v724_v45 = vpop.f32.mrb[2].mxu0 }
 0x355   : > { %v741_v47 = vadd.f32 %v739_v43, %v733_v28  ;;  %v725_v48 = vpop.f32.mrb[3].mxu0 }
 0x356   : > { %v742_v49 = vadd.f32 %v739_v43, %v734_v44 }
 0x357   : > { %v743_v53 = vmax.f32 %v741_v47, 0.0 }
 0x358   : > { %v744_v54 = vmax.f32 %v742_v49, 0.0 }
 0x359   : > { %747 = vrot.lane.b32.xlu1 %v743_v53, %s1695_s24 }
 0x35a   : > { %749 = vrot.lane.b32.xlu0 %v744_v54, %s1695_s24  ;;  %s1131_s24 = sshll.u32 %s1773_s11, 8  ;;  %s943_s11 = scalar_lea.sflag [#allocation4], %s2019_s19 }
 0x3cb   : > { %v748_v55 = vpop.permute.xlu1 %747 }
 0x3cc   : > { %v755_v56 = vsel %vm486_vm4, 0.0, %v748_v55  ;;  %v750_v58 = vpop.permute.xlu0 %749 }
 0x3cd   : > { %v751_v59 = vsel %vm486_vm4, %v748_v55, %v750_v58  ;;  %v756_v60 = vsel %vm486_vm4, %v750_v58, 0.0  ;;  %812 = vrot.lane.b32.xlu1 %v755_v56, %s1700_s22  ;;  %776 = vrot.lane.b32.xlu0 %v755_v56, %s1698_s20  ;;  %v762_v62 = vmul.f32 %v2084_v38, %v755_v56  ;;  %v765_v1 = vmul.f32 %v2101_v46, %v755_v56 }
 0x3ce   : > { %v1342_v61 = vpack.i.bf16 %v756_v60, %v751_v59  ;;  %v759_v2 = vmul.f32 %v2080_v36, %v755_v56  ;;  %v763_v4 = vmul.f32 %v751_v59, %v2094_v42  ;;  %v764_v5 = vmul.f32 %v2082_v37, %v756_v60 }
 0x3cf   : > { %v760_v6 = vmul.f32 %v751_v59, %v2088_v40  ;;  %v761_v7 = vmul.f32 %v2076_v34, %v756_v60  ;;  %v766_v9 = vmul.f32 %v751_v59, %v2109_v50  ;;  %v767_v46 = vmul.f32 %v2090_v41, %v756_v60 }
 0x3d0   : > { %v1352_v38 = vpack.i.bf16 %v764_v5, %v763_v4  ;;  %v768_v37 = vmul.f32 %v2113_v52, %v755_v56  ;;  %v769_v40 = vmul.f32 %v751_v59, %v2126_v57  ;;  %v770_v34 = vmul.f32 %v2111_v51, %v756_v60  ;;  %v882_v51 = vld [vmem:[#allocation14] sm:$0xff] }
 0x3d1   : > { %1343 = vrot.lane.b32.xlu0 %v1342_v61, %s1699_s18  ;;  %1333 = vrot.lane.b32.xlu1 %v1342_v61, %s1698_s20  ;;  %v1347_v8 = vpack.i.bf16 %v761_v7, %v760_v6  ;;  %v1357_v36 = vpack.i.bf16 %v767_v46, %v766_v9  ;;  %v771_v50 = vmul.f32 %v2140_v0, %v755_v56 }
 0x3d2   : > { %v1362_v42 = vpack.i.bf16 %v770_v34, %v769_v40  ;;  %v772_v41 = vmul.f32 %v751_v59, %v2146_v3  ;;  %v773_v10 = vmul.f32 %v2136_v63, %v756_v60  ;;  %v758_v3 = vmul.f32 %v2049_v17, %v751_v59 }
 0x3d3   : > { %v757_v15 = vmul.f32 %v2047_v16, %v755_v56 }
 0x3d4   : > { %v1367_v52 = vpack.i.bf16 %v772_v41, %v771_v50 }
 0x3d5   : > { %802 = vrot.lane.b32.xlu0 %v762_v62, %s1701_s14  ;;  %1338 = vrot.lane.b32.xlu1 %v1342_v61, %s1700_s22  ;;  %s2251_s22 = scalar_lea.hbm %s2303_s8, %s1131_s24 }
 0x3d9   : > { %825 = vrot.lane.b32.xlu0 %v765_v1, %s1703_s12  ;;  %789 = vrot.lane.b32.xlu1 %v759_v2, %s1702_s9 }
 0x3dd   : > { %1353 = vrot.lane.b32.xlu0 %v1352_v38, %s1701_s14  ;;  %1348 = vrot.lane.b32.xlu1 %v1347_v8, %s1702_s9  ;;  %s1706_s14 = smov [#allocation16]  }
 0x3de   : > { %s1602_s9 = sshll.u32 %s1706_s14, 4  ;;  %s1603_s9 = int_to_ptr.vmem [resolvable:$false] %s1602_s9 }
 0x3df   : > { %p1605_p2 = scmp.lt.s32.totalorder %s2253_s15, %s1603_s9 }
 0x3e1   : > { %1358 = vrot.lane.b32.xlu0 %v1357_v36, %s1703_s12  ;;  %838 = vrot.lane.b32.xlu1 %v768_v37, %s1704_s16  ;;  %s1604_s12 = scalar_lea.vmem %s1603_s9, 512 }
 0x3e2   : > { %p1606_p0 = scmp.lt.s32.totalorder %s1604_s12, %s1598_s21 }
 0x3e4   : > { %p1607_p6 = por %p1606_p0, %p1605_p2 }
 0x3e5   : > { %848 = vrot.lane.b32.xlu0 %v755_v56, %s1699_s18  ;;  %1363 = vrot.lane.b32.xlu1 %v1362_v42, %s1704_s16 }
 0x3e6   : > { %p1608_p4 = pnand %p1607_p6, %p1601_p3 }
 0x3e9   : > { %865 = vrot.lane.b32.xlu0 %v773_v10, %s1705_s23  ;;  %1368 = vrot.lane.b32.xlu1 %v1367_v52, %s1705_s23 }
 0x3ed   : > { %885 = vperm.xlu1 %1331, %v882_v51   ;;  %v881_v51 = vld [vmem:[#allocation13] sm:$0xf] }
 0x43f   : > { %v813_v57 = vpop.permute.xlu1 %812  ;;  %v777_v11 = vpop.permute.xlu0 %776 }
 0x443   : > { %v1334_v12 = vpop.permute.xlu1 %1333  ;;  %v1344_v13 = vpop.permute.xlu0 %1343 }
 0x444   : > { %v1336_v0 = vunpack.i.h.bf16 %v1334_v12  ;;  %v1335_v14 = vunpack.i.l.bf16 %v1334_v12  ;;  %v1346_v54 = vunpack.i.h.bf16 %v1344_v13  ;;  %v1345_v55 = vunpack.i.l.bf16 %v1344_v13 }
 0x446   : > { %v783_v18 = vsel %vm567_vm10, %v1335_v14, %v1336_v0  ;;  %v782_v63 = vsel %vm567_vm10, %v777_v11, %v1335_v14  ;;  %v855_v8 = vsel %vm645_vm0, %v1345_v55, %v1346_v54 }
 0x447   : > { %v1339_v20 = vpop.permute.xlu1 %1338  ;;  %v803_v22 = vpop.permute.xlu0 %802  ;;  %v872_v23 = vpack.c.bf16 %v783_v18, %v758_v3  ;;  %v871_v24 = vpack.c.bf16 %v782_v63, %v757_v15 }
 0x448   : > { %v1341_v31 = vunpack.i.h.bf16 %v1339_v20  ;;  %v1340_v16 = vunpack.i.l.bf16 %v1339_v20 }
 0x449   : > { %897 = vmatprep.subr.bf16.mxu1 %v872_v23 }
 0x44a   : > { %898 = vmatpush1.bf16.msra.mxu1 %v871_v24  ;;  %v819_v56 = vsel %vm606_vm13, %v1340_v16, %v1341_v31  ;;  %v818_v59 = vsel %vm606_vm13, %v813_v57, %v1340_v16 }
 0x44b   : > { %v790_v25 = vpop.permute.xlu1 %789  ;;  %v826_v26 = vpop.permute.xlu0 %825 }
 0x44f   : > { %v1349_v27 = vpop.permute.xlu1 %1348  ;;  %v1354_v29 = vpop.permute.xlu0 %1353 }
 0x450   : > { %v1351_v30 = vunpack.i.h.bf16 %v1349_v27  ;;  %v1350_v32 = vunpack.i.l.bf16 %v1349_v27  ;;  %v1356_v33 = vunpack.i.h.bf16 %v1354_v29  ;;  %v1355_v17 = vunpack.i.l.bf16 %v1354_v29 }
 0x452   : > { %v796_v35 = vsel %vm581_vm12, %v1350_v32, %v1351_v30  ;;  %v809_v28 = vsel %vm595_vm11, %v1355_v17, %v1356_v33  ;;  %v795_v39 = vsel %vm581_vm12, %v790_v25, %v1350_v32  ;;  %v808_v43 = vsel %vm595_vm11, %v803_v22, %v1355_v17 }
 0x453   : > { %v839_v44 = vpop.permute.xlu1 %838  ;;  %v1359_v45 = vpop.permute.xlu0 %1358  ;;  %v874_v47 = vpack.c.bf16 %v809_v28, %v796_v35  ;;  %v873_v48 = vpack.c.bf16 %v808_v43, %v795_v39 }
 0x454   : > { %v1361_v49 = vunpack.i.h.bf16 %v1359_v45  ;;  %v1360_v53 = vunpack.i.l.bf16 %v1359_v45 }
 0x455   : > { %899 = vmatprep.subr.bf16.mxu1 %v874_v47 }
 0x456   : > { %900 = vmatpush1.bf16.msra.mxu1 %v873_v48  ;;  %v832_v58 = vsel %vm620_vm14, %v1360_v53, %v1361_v49  ;;  %v831_v60 = vsel %vm620_vm14, %v826_v26, %v1360_v53 }
 0x457   : > { %v1364_v61 = vpop.permute.xlu1 %1363  ;;  %v849_v62 = vpop.permute.xlu0 %848  ;;  %v876_v1 = vpack.c.bf16 %v832_v58, %v819_v56  ;;  %v875_v2 = vpack.c.bf16 %v831_v60, %v818_v59 }
 0x458   : > { %v1366_v4 = vunpack.i.h.bf16 %v1364_v61  ;;  %v1365_v5 = vunpack.i.l.bf16 %v1364_v61  ;;  %v854_v7 = vsel %vm645_vm0, %v849_v62, %v1345_v55 }
 0x459   : > { %901 = vmatprep.subr.bf16.mxu1 %v876_v1 }
 0x45a   : > { %v844_v6 = vsel %vm634_vm15, %v839_v44, %v1365_v5  ;;  %902 = vmatpush1.bf16.msra.mxu1 %v875_v2  ;;  %v845_v38 = vsel %vm634_vm15, %v1365_v5, %v1366_v4 }
 0x45b   : > { %v877_v9 = vpack.c.bf16 %v854_v7, %v844_v6  ;;  %v1369_v46 = vpop.permute.xlu1 %1368  ;;  %v878_v36 = vpack.c.bf16 %v855_v8, %v845_v38  ;;  %v866_v34 = vpop.permute.xlu0 %865 }
 0x45c   : > { %v1371_v37 = vunpack.i.h.bf16 %v1369_v46  ;;  %v1370_v40 = vunpack.i.l.bf16 %v1369_v46 }
 0x45d   : > { %903 = vmatprep.subr.bf16.mxu1 %v878_v36 }
 0x45e   : > { %v868_v42 = vsel %vm659_vm1, %v1371_v37, %v866_v34  ;;  %904 = vmatpush1.bf16.msra.mxu1 %v877_v9  ;;  %v867_v50 = vsel %vm659_vm1, %v1370_v40, %v1371_v37 }
 0x45f   : > { %v880_v41 = vpack.c.bf16 %v868_v42, %v868_v42  ;;  %v879_v10 = vpack.c.bf16 %v867_v50, %v867_v50 }
 0x461   : > { %1123 = vmatprep.subr.msk.bf16.mxu1 %vm679_vm2, %v880_v41  ;;  %v892_v52 = vsel %vm679_vm2, %v879_v10, 0 }
 0x462   : > { %906 = vmatpush1.bf16.msra.mxu1 %v892_v52 }
 0x465   : > { %1124 = vmatmul.mubr.msk.bf16.vlgmr.msra.gmra.mrb[0].mxu1 %vm675_vm3, %v881_v51 }
 0x46c   : > { %v886_v57 = vpop.permute.xlu1 %885 }
 0x538   : > { %v931_v11 = vpop.f32.mrb[0].mxu1 }
 0x539   : > { %v932_v12 = vadd.f32 %v931_v11, %v886_v57  ;;  %v933_v13 = vpop.f32.mrb[1].mxu1 }
 0x53a   : > { %v934_v0 = vadd.f32 %v933_v13, %v886_v57  ;;  %v935_v14 = vpop.f32.mrb[2].mxu1 }
 0x53b   : > { %v938_v3 = vadd.f32 %v932_v12, %v2052_v19  ;;  %v936_v15 = vpop.f32.mrb[3].mxu1 }
 0x53c   : > { %v939_v18 = vadd.f32 %v934_v0, %v2056_v21 }
 0x53d   : > { %940 = vst [vmem:[%s409_s25] sm:$0xff] %v938_v3 }
 0x53e   : > { %941 = vst [vmem:[%s409_s25 + $0x8] sm:$0xff] %v939_v18 }
 0x53f   : > { %1611 = shalt.err (!%p1608_p4)
}
 0x540   : > { %s1612_s19 = scalar_lea.hbm %s2251_s22, 256  ;;  %s1616_s24 = scalar_lea.hbm %s2303_s8, 512 }
 0x541   : > { %p1613_p11 = scmp.ne.s32.totalorder %s2251_s22, %s1612_s19  ;;  %p1617_p9 = scmp.lt.u32.totalorder %s2251_s22, %s2303_s8 }
 0x542   : > { %p1618_p7 = scmp.lt.u32.totalorder %s1616_s24, %s1612_s19  ;;  %p1620_p12 = scmp.lt.u32.totalorder %s1612_s19, %s2251_s22 }
 0x543   : > { %p1614_p8 = pnand %p1613_p11, %p2324_p13 }
 0x544   : > { %p1619_p10 = por %p1618_p7, %p1617_p9 }
 0x545   : > { %p1615_p5 = pneg %p1614_p8 }
 0x546   : > { %p1621_p1 = por %p1620_p12, %p1619_p10 }
 0x548   : > { %p1622_p3 = pnand %p1621_p1, %p1615_p5 }
 0x54a   : > { %1625 = shalt.err (!%p1622_p3)
}
 0x54b   : > { %1162 = dma.vmem_to_hbm [thread:$0]  (%p2324_p13), %s2253_s15, 256, %s2251_s22, %s943_s11  }
 0x54c PF: > { %s969_s18 = sand.u32 1, %s1668_s27   ;;  %p2325_p2 = scmp.ne.s32.totalorder %s2313_s13, 0 }
 0x54d   : > { %p2326_p0 = scmp.ge.s32.totalorder %s1680_s30, 2  ;;  %s970_s21 = scalar_lea.sflag [#allocation4], %s969_s18 }
 0x54f   : > { %p1191_p6 = pnand %p2326_p0, %p2325_p2 }
 0x551   : > { %1663 = dma.done.wait (!%p1191_p6), %s970_s21, 256  }
 0x552   : > { %1665 = vsyncadd (!%p1191_p6), %s970_s21, 4294967040  ;;  %p25_p4 = scmp.ge.s32.totalorder %s1949_s17, 4   ;;  %s2327_s27 = smov %s1672_s28 }
 0x553   : > { %s2328_s28 = smov %s1676_s29  ;;  %s2329_s29 = smov %s1961_s26 }
 0x554   : > { %s2330_s30 = smov %s1949_s17  ;;  %27 = sbr.rel (!%p25_p4) target bundleno = 9 (0x9), region = 125 }
 0x55b   :  { %975 = vsyncpa [#allocation3], 1 }
 0x55c   :  { %977 = vsyncpa [#allocation3 + $0x1], 1 }
 0x55d   :  { %978 = vsyncpa [#allocation6], 1 }
 0x55e   :  { %979 = vsyncpa [#allocation9], 1 }
 0x55f   :  { %980 = vsyncpa [#allocation12], 1 }
 0x560   :  { %981 = vsyncpa [#allocation15], 1 }
 0x561   :  { %982 = vsyncpa [#allocation4], 1 }
 0x562   :  { %984 = vsyncpa [#allocation4 + $0x1], 1 }

// kernel: tpu_custom_call.1
= control target key start
LH: loop header
LB: loop body
LE: loop exit
PB: predicated region body
PF: predicated region fallthrough
CT: control target
= control target key end

     0   :  { %13 = vsyncpa [#allocation3], 0  ;;  %s2295_s0 = inlined_call_operand.hbm [shape: f32[2,8,256], index: 0, kind: input, shape index: {}]   ;;  %s2296_s1 = inlined_call_operand.hbm [shape: f32[8,1], index: 1, kind: input, shape index: {}]   ;;  %s2297_s2 = inlined_call_operand.hbm [shape: f32[8,1], index: 2, kind: input, shape index: {}]   ;;  %s2298_s3 = inlined_call_operand.hbm [shape: bf16[8,72], index: 3, kind: input, shape index: {}]   ;;  %s2299_s4 = inlined_call_operand.hbm [shape: f32[8,1], index: 4, kind: input, shape index: {}]   ;;  %s2300_s5 = inlined_call_operand.hbm [shape: f32[8,1], index: 5, kind: input, shape index: {}]   ;;  %s2301_s6 = inlined_call_operand.hbm [shape: bf16[8,72], index: 6, kind: input, shape index: {}]   ;;  %s2302_s7 = inlined_call_operand.hbm [shape: f32[8,1], index: 7, kind: input, shape index: {}]   ;;  %s2303_s8 = inlined_call_operand.hbm [shape: f32[2,8,256], index: 8, kind: output, shape index: {}]  }
   0x1   :  { %15 = vsyncpa [#allocation3 + $0x1], 0 }
   0x2   :  { %16 = vsyncpa [#allocation6], 0 }
   0x3   :  { %17 = vsyncpa [#allocation9], 0 }
   0x4   :  { %18 = vsyncpa [#allocation12], 0 }
   0x5   :  { %19 = vsyncpa [#allocation15], 0 }
   0x6   :  { %20 = vsyncpa [#allocation4], 0 }
   0x7   :  { %22 = vsyncpa [#allocation4 + $0x1], 0  ;;  %s1752_s27 = smov 0   ;;  %s1754_s28 = smov 0  }
   0x8   :  { %s1756_s29 = smov 0   ;;  %s1758_s30 = smov 0  }
   0x9 LB: > { %s1682_s9 = smov [#allocation5]   ;;  %s1773_s11 = sadd.s32 4294967295, %s1680_s30   ;;  %s1680_s30 = sphi %s1758_s30, %s2330_s30   ;;  %s1676_s29 = sphi %s1756_s29, %s2329_s29   ;;  %s1672_s28 = sphi %s1754_s28, %s2328_s28   ;;  %s1668_s27 = sphi %s1752_s27, %s2327_s27  }
   0xa   : > { %s245_s10 = sshll.u32 %s1682_s9, 4  ;;  %p1095_p0 = scmp.ge.s32.totalorder %s1680_s30, 1  ;;  %s1778_s10 = int_to_ptr.vmem [resolvable:$true] %s245_s10 }
   0xb   : > { %p2304_p1 = scmp.eq.s32.totalorder %s1773_s11, 0  ;;  %p232_p2 = scmp.lt.s32.totalorder %s1680_s30, 3 }
   0xc   : > { %s1683_s13 = smov [#allocation8]   ;;  %s1684_s15 = smov [#allocation11]  }
   0xd   : > { %p1780_p3 = pnand %p1095_p0, %p232_p2  ;;  %s267_s14 = sshll.u32 %s1683_s13, 4  ;;  %s1787_s14 = int_to_ptr.vmem [resolvable:$true] %s267_s14 }
   0xe   : > { %s289_s16 = sshll.u32 %s1684_s15, 4  ;;  %s1685_s18 = smov [#allocation7]   ;;  %s1795_s16 = int_to_ptr.vmem [resolvable:$true] %s289_s16 }
   0xf   : > { %s2307_s12 = scalar_select %p1780_p3, 1, 0 }
  0x10   : > { %p1164_p5 = pneg %p1780_p3  ;;  %s1797_s19 = sshll.u32 %s1685_s18, 4  ;;  %s257_s19 = int_to_ptr.vmem [resolvable:$true] %s1797_s19 }
  0x11   : > { %s1372_s22 = scalar_lea.hbm %s2296_s1, 128 }
  0x12   : > { %p1791_p6 = pnand %p1164_p5, %p2304_p1  ;;  %p1373_p7 = scmp.ne.s32.totalorder %s2296_s1, %s1372_s22 }
  0x13   : > { %p1379_p11 = scmp.lt.u32.totalorder %s1372_s22, %s2296_s1 }
  0x14   : > { %p1807_p8 = pneg %p1791_p6 }
  0x16   : > { %p1375_p9 = pnand %p1807_p8, %p1373_p7 }
  0x18   : > { %p1376_p10 = pneg %p1375_p9 }
  0x1a   : > { %p1381_p12 = pnand %p1379_p11, %p1376_p10 }
  0x1c   : > { %1384 = shalt.err (!%p1381_p12)
}
  0x1d   : > { %s1385_s13 = scalar_lea.vmem %s1778_s10, 128  ;;  %p1393_p5 = scmp.lt.s32.totalorder %s1778_s10, %s1778_s10 }
  0x1e   : > { %p1386_p13 = scmp.ne.s32.totalorder %s1778_s10, %s1385_s13  ;;  %p1394_p4 = scmp.lt.s32.totalorder %s1385_s13, %s1385_s13 }
  0x20   : > { %p1388_p0 = pnand %p1386_p13, %p1807_p8  ;;  %p1395_p7 = por %p1394_p4, %p1393_p5 }
  0x22   : > { %p1389_p2 = pneg %p1388_p0 }
  0x24   : > { %p1396_p9 = pnand %p1395_p7, %p1389_p2 }
  0x26   : > { %1399 = shalt.err (!%p1396_p9)
}
  0x27   : > { %1167 = dma.hbm_to_vmem [thread:$0]  (!%p1791_p6), %s2296_s1, 128, %s1778_s10, [#allocation6]  }
  0x28   : > { %s1400_s22 = scalar_lea.hbm %s2298_s3, 64 }
  0x29   : > { %p1401_p10 = scmp.ne.s32.totalorder %s2298_s3, %s1400_s22  ;;  %p1407_p12 = scmp.lt.u32.totalorder %s1400_s22, %s2298_s3 }
  0x2b   : > { %p1403_p4 = pnand %p1401_p10, %p1807_p8 }
  0x2d   : > { %p1404_p11 = pneg %p1403_p4 }
  0x2f   : > { %p1409_p13 = pnand %p1407_p12, %p1404_p11 }
  0x31   : > { %1412 = shalt.err (!%p1409_p13)
}
  0x32   : > { %s1413_s10 = scalar_lea.vmem %s1787_s14, 64  ;;  %p1421_p7 = scmp.lt.s32.totalorder %s1787_s14, %s1787_s14 }
  0x33   : > { %p1414_p0 = scmp.ne.s32.totalorder %s1787_s14, %s1413_s10  ;;  %p1422_p9 = scmp.lt.s32.totalorder %s1413_s10, %s1413_s10 }
  0x35   : > { %p1416_p2 = pnand %p1414_p0, %p1807_p8  ;;  %p1423_p10 = por %p1422_p9, %p1421_p7 }
  0x37   : > { %p1417_p5 = pneg %p1416_p2 }
  0x39   : > { %p1424_p4 = pnand %p1423_p10, %p1417_p5 }
  0x3b   : > { %1427 = shalt.err (!%p1424_p4)
}
  0x3c   : > { %1173 = dma.hbm_to_vmem [thread:$0]  (!%p1791_p6), %s2298_s3, 64, %s1787_s14, [#allocation9]  }
  0x3d   : > { %s1428_s21 = scalar_lea.hbm %s2300_s5, 128 }
  0x3e   : > { %p1429_p11 = scmp.ne.s32.totalorder %s2300_s5, %s1428_s21  ;;  %p1435_p0 = scmp.lt.u32.totalorder %s1428_s21, %s2300_s5 }
  0x40   : > { %p1431_p12 = pnand %p1429_p11, %p1807_p8 }
  0x42   : > { %p1432_p13 = pneg %p1431_p12 }
  0x44   : > { %p1437_p2 = pnand %p1435_p0, %p1432_p13 }
  0x46   : > { %1440 = shalt.err (!%p1437_p2)
}
  0x47   : > { %s1441_s14 = scalar_lea.vmem %s1795_s16, 128  ;;  %p1449_p10 = scmp.lt.s32.totalorder %s1795_s16, %s1795_s16 }
  0x48   : > { %p1442_p5 = scmp.ne.s32.totalorder %s1795_s16, %s1441_s14  ;;  %p1450_p4 = scmp.lt.s32.totalorder %s1441_s14, %s1441_s14 }
  0x4a   : > { %p1444_p7 = pnand %p1442_p5, %p1807_p8  ;;  %p1451_p11 = por %p1450_p4, %p1449_p10 }
  0x4c   : > { %p1445_p9 = pneg %p1444_p7 }
  0x4e   : > { %p1452_p12 = pnand %p1451_p11, %p1445_p9 }
  0x50   : > { %1455 = shalt.err (!%p1452_p12)
}
  0x51   : > { %1179 = dma.hbm_to_vmem [thread:$0]  (!%p1791_p6), %s2300_s5, 128, %s1795_s16, [#allocation12]  }
  0x52   : > { %s1686_s13 = smov [#allocation10]   ;;  %s1456_s21 = scalar_lea.hbm %s2297_s2, 128 }
  0x53   : > { %s278_s15 = sshll.u32 %s1686_s13, 4  ;;  %p1457_p13 = scmp.ne.s32.totalorder %s2297_s2, %s1456_s21  ;;  %s279_s15 = int_to_ptr.vmem [resolvable:$true] %s278_s15 }
  0x54   : > { %p1463_p5 = scmp.lt.u32.totalorder %s1456_s21, %s2297_s2 }
  0x55   : > { %p1459_p0 = pnand %p1457_p13, %p1807_p8 }
  0x57   : > { %p1460_p2 = pneg %p1459_p0 }
  0x59   : > { %p1465_p7 = pnand %p1463_p5, %p1460_p2 }
  0x5b   : > { %1468 = shalt.err (!%p1465_p7)
}
  0x5c   : > { %s1469_s16 = scalar_lea.vmem %s257_s19, 128  ;;  %p1477_p11 = scmp.lt.s32.totalorder %s257_s19, %s257_s19 }
  0x5d   : > { %p1470_p9 = scmp.ne.s32.totalorder %s257_s19, %s1469_s16  ;;  %p1478_p12 = scmp.lt.s32.totalorder %s1469_s16, %s1469_s16 }
  0x5f   : > { %p1472_p10 = pnand %p1470_p9, %p1807_p8  ;;  %p1479_p1 = por %p1478_p12, %p1477_p11 }
  0x61   : > { %p1473_p4 = pneg %p1472_p10 }
  0x63   : > { %p1480_p3 = pnand %p1479_p1, %p1473_p4 }
  0x65   : > { %1483 = shalt.err (!%p1480_p3)
}
  0x66   : > { %1170 = dma.hbm_to_vmem [thread:$0]  (!%p1791_p6), %s2297_s2, 128, %s257_s19, [#allocation6]  }
  0x67   : > { %s1484_s18 = scalar_lea.hbm %s2299_s4, 128 }
  0x68   : > { %p1485_p13 = scmp.ne.s32.totalorder %s2299_s4, %s1484_s18  ;;  %p1491_p3 = scmp.lt.u32.totalorder %s1484_s18, %s2299_s4 }
  0x6a   : > { %p1487_p0 = pnand %p1485_p13, %p1807_p8 }
  0x6c   : > { %p1488_p1 = pneg %p1487_p0 }
  0x6e   : > { %p1493_p2 = pnand %p1491_p3, %p1488_p1 }
  0x70   : > { %1496 = shalt.err (!%p1493_p2)
}
  0x71   : > { %s1497_s24 = scalar_lea.vmem %s279_s15, 128  ;;  %p1505_p10 = scmp.lt.s32.totalorder %s279_s15, %s279_s15 }
  0x72   : > { %p1498_p5 = scmp.ne.s32.totalorder %s279_s15, %s1497_s24  ;;  %p1506_p4 = scmp.lt.s32.totalorder %s1497_s24, %s1497_s24 }
  0x74   : > { %p1500_p7 = pnand %p1498_p5, %p1807_p8  ;;  %p1507_p11 = por %p1506_p4, %p1505_p10 }
  0x76   : > { %p1501_p9 = pneg %p1500_p7 }
  0x78   : > { %p1508_p12 = pnand %p1507_p11, %p1501_p9 }
  0x7a   : > { %1511 = shalt.err (!%p1508_p12)
}
  0x7b   : > { %1176 = dma.hbm_to_vmem [thread:$0]  (!%p1791_p6), %s2299_s4, 128, %s279_s15, [#allocation9]  }
  0x7c   : > { %s1687_s16 = smov [#allocation13]   ;;  %s1688_s9 = smov [#allocation14]  }
  0x7d   : > { %s300_s14 = sshll.u32 %s1687_s16, 4  ;;  %s311_s10 = sshll.u32 %s1688_s9, 4  ;;  %s301_s14 = int_to_ptr.vmem [resolvable:$true] %s300_s14  ;;  %s312_s10 = int_to_ptr.vmem [resolvable:$true] %s311_s10 }
  0x7e   : > { %s1512_s20 = scalar_lea.hbm %s2301_s6, 64 }
  0x7f   : > { %p1513_p13 = scmp.ne.s32.totalorder %s2301_s6, %s1512_s20  ;;  %p1519_p3 = scmp.lt.u32.totalorder %s1512_s20, %s2301_s6 }
  0x81   : > { %p1515_p0 = pnand %p1513_p13, %p1807_p8 }
  0x83   : > { %p1516_p1 = pneg %p1515_p0 }
  0x85   : > { %p1521_p2 = pnand %p1519_p3, %p1516_p1 }
  0x87   : > { %1524 = shalt.err (!%p1521_p2)
}
  0x88   : > { %s1525_s15 = scalar_lea.vmem %s301_s14, 64  ;;  %p1533_p10 = scmp.lt.s32.totalorder %s301_s14, %s301_s14 }
  0x89   : > { %p1526_p5 = scmp.ne.s32.totalorder %s301_s14, %s1525_s15  ;;  %p1534_p4 = scmp.lt.s32.totalorder %s1525_s15, %s1525_s15 }
  0x8b   : > { %p1528_p7 = pnand %p1526_p5, %p1807_p8  ;;  %p1535_p11 = por %p1534_p4, %p1533_p10 }
  0x8d   : > { %p1529_p9 = pneg %p1528_p7 }
  0x8f   : > { %p1536_p12 = pnand %p1535_p11, %p1529_p9 }
  0x91   : > { %1539 = shalt.err (!%p1536_p12)
}
  0x92   : > { %1182 = dma.hbm_to_vmem [thread:$0]  (!%p1791_p6), %s2301_s6, 64, %s301_s14, [#allocation12]  }
  0x93   : > { %s1540_s13 = scalar_lea.hbm %s2302_s7, 128 }
  0x94   : > { %p1541_p13 = scmp.ne.s32.totalorder %s2302_s7, %s1540_s13  ;;  %p1547_p3 = scmp.lt.u32.totalorder %s1540_s13, %s2302_s7 }
  0x96   : > { %p1543_p0 = pnand %p1541_p13, %p1807_p8 }
  0x98   : > { %p1544_p1 = pneg %p1543_p0 }
  0x9a   : > { %p1549_p2 = pnand %p1547_p3, %p1544_p1 }
  0x9c   : > { %1552 = shalt.err (!%p1549_p2)
}
  0x9d   : > { %s1553_s23 = scalar_lea.vmem %s312_s10, 128  ;;  %p1561_p10 = scmp.lt.s32.totalorder %s312_s10, %s312_s10 }
  0x9e   : > { %p1554_p5 = scmp.ne.s32.totalorder %s312_s10, %s1553_s23  ;;  %p1562_p4 = scmp.lt.s32.totalorder %s1553_s23, %s1553_s23 }
  0xa0   : > { %p1556_p7 = pnand %p1554_p5, %p1807_p8  ;;  %p1563_p11 = por %p1562_p4, %p1561_p10 }
  0xa2   : > { %p1557_p9 = pneg %p1556_p7 }
  0xa4   : > { %p1564_p12 = pnand %p1563_p11, %p1557_p9 }
  0xa6   : > { %1567 = shalt.err (!%p1564_p12)
}
  0xa7   : > { %1185 = dma.hbm_to_vmem [thread:$0]  (!%p1791_p6), %s2302_s7, 128, %s312_s10, [#allocation15]  }
  0xa8   : > { %s1094_s25 = sadd.s32 4294967294, %s1680_s30   ;;  %s1949_s17 = sadd.s32 1, %s1680_s30  }
  0xa9   : > { %s35_s15 = sadd.s32 1, %s1676_s29  ;;  %s32_s19 = ssub.s32 %s1680_s30, %s1949_s17 }
  0xaa   : > { %p42_p8 = scmp.ne.s32.totalorder %s1676_s29, %s1672_s28  ;;  %p33_p13 = scmp.eq.s32.totalorder %s32_s19, 0 }
  0xab   : > { %p43_p0 = scmp.eq.s32.totalorder %s1680_s30, 0  ;;  %p48_p1 = scmp.ne.s32.totalorder %s1672_s28, %s1668_s27 }
  0xac   : > { %p219_p3 = scmp.eq.s32.totalorder %s1773_s11, 1  ;;  %p2310_p5 = scmp.eq.s32.totalorder %s1773_s11, 0 }
  0xad   : > { %s1961_s26 = scalar_select %p33_p13, %s1676_s29, %s35_s15  }
  0xae   : > { %p44_p2 = por %p43_p0, %p42_p8  ;;  %p1965_p7 = por %p2310_p5, %p48_p1 }
  0xaf   : > { %p1969_p6 = por %p219_p3, %p42_p8  ;;  %p225_p9 = scmp.eq.s32.totalorder %s1094_s25, 1 }
  0xb0   : > { %p1201_p10 = scmp.lt.s32.totalorder %s1680_s30, 2  ;;  %s322_s9 = sand.u32 1, %s1676_s29  }
  0xb1   : > { %s2312_s10 = scalar_select %p1969_p6, 1, 0 }
  0xb2   : > { %p1975_p4 = por %p225_p9, %p48_p1  ;;  %s1104_s18 = sshll.u32 %s322_s9, 4 }
  0xb3   : > { %s1130_s20 = sshll.u32 %s1680_s30, 8  ;;  %s326_s14 = scalar_lea.vmem [#allocation2], %s1104_s18 }
  0xb4   : > { %s2313_s13 = scalar_select %p1975_p4, 1, 0 }
  0xb5   : > { %s1983_s23 = scalar_lea.hbm %s2295_s0, %s1130_s20  ;;  %s334_s24 = sshll.u32 %s326_s14, 4  ;;  %s1989_s24 = int_to_ptr.vmem [resolvable:$true] %s334_s24 }
  0xb6   : > { %p1985_p11 = pnand %p1201_p10, %p44_p2  ;;  %s323_s15 = scalar_lea.sflag [#allocation3], %s322_s9 }
  0xb7   : > { %s1568_s19 = scalar_lea.hbm %s1983_s23, 256  ;;  %s1573_s21 = scalar_lea.hbm %s2295_s0, 512 }
  0xb8   : > { %p1569_p12 = scmp.ne.s32.totalorder %s1983_s23, %s1568_s19  ;;  %p1570_p8 = pneg %p1985_p11 }
  0xb9   : > { %p1574_p1 = scmp.lt.u32.totalorder %s1983_s23, %s2295_s0  ;;  %p1575_p3 = scmp.lt.u32.totalorder %s1573_s21, %s1568_s19 }
  0xba   : > { %p1571_p13 = pnand %p1570_p8, %p1569_p12  ;;  %p1577_p5 = scmp.lt.u32.totalorder %s1568_s19, %s1983_s23 }
  0xbb   : > { %p1576_p2 = por %p1575_p3, %p1574_p1 }
  0xbc   : > { %p1572_p0 = pneg %p1571_p13 }
  0xbd   : > { %p1578_p9 = por %p1577_p5, %p1576_p2 }
  0xbf   : > { %p1579_p10 = pnand %p1578_p9, %p1572_p0 }
  0xc1   : > { %1582 = shalt.err (!%p1579_p10)
}
  0xc2   : > { %s1583_s9 = scalar_lea.vmem %s1989_s24, 256  ;;  %s1689_s20 = smov [#allocation2]  }
  0xc3   : > { %p1584_p12 = scmp.ne.s32.totalorder %s1989_s24, %s1583_s9  ;;  %s1588_s18 = sshll.u32 %s1689_s20, 4  ;;  %s1589_s18 = int_to_ptr.vmem [resolvable:$false] %s1588_s18 }
  0xc4   : > { %s1590_s22 = scalar_lea.vmem %s1589_s18, 512  ;;  %p1591_p6 = scmp.lt.s32.totalorder %s1989_s24, %s1589_s18 }
  0xc5   : > { %p1586_p13 = pnand %p1584_p12, %p1570_p8  ;;  %p1592_p1 = scmp.lt.s32.totalorder %s1590_s22, %s1583_s9 }
  0xc7   : > { %p1587_p4 = pneg %p1586_p13  ;;  %p1593_p3 = por %p1592_p1, %p1591_p6 }
  0xc9   : > { %p1594_p2 = pnand %p1593_p3, %p1587_p4 }
  0xcb   : > { %1597 = shalt.err (!%p1594_p2)
}
  0xcc   : > { %1189 = dma.hbm_to_vmem [thread:$0]  (!%p1985_p11), %s1983_s23, 256, %s1989_s24, %s323_s15  }
  0xcd   : > { %p2315_p0 = scmp.ne.s32.totalorder %s2307_s12, 0 }
  0xce   : > { %s2019_s19 = sand.u32 (!%p2315_p0), 1, %s1672_s28  }
  0xcf   : > { %343 = sbr.rel (%p2315_p0) target bundleno = 1356 (0x54c), region = 52  ;;  %s1108_s21 = sshll.u32 (!%p2315_p0), %s2019_s19, 4 }
  0xd0   : > { %s346_s14 = scalar_lea.sflag (!%p2315_p0), [#allocation3], %s2019_s19  ;;  %s2025_s9 = scalar_lea.vmem (!%p2315_p0), [#allocation2], %s1108_s21 }
  0xd6   : > { %1643 = dma.done.wait (%p1965_p7), %s346_s14, 256  }
  0xd7   : > { %1645 = vsyncadd (%p1965_p7), %s346_s14, 4294967040  ;;  %p2316_p6 = scmp.eq.s32.totalorder %s1773_s11, 0 }
  0xd9   : > { %1647 = dma.done.wait (%p2316_p6), [#allocation6], 256   ;;  %p2317_p4 = pmov %p2316_p6 }
  0xdb   : > { %1649 = vsyncadd (%p2317_p4), [#allocation6], 4294967040  ;;  %p2318_p11 = pmov %p2317_p4 }
  0xdc   : > { %p2319_p8 = pmov %p2317_p4 }
  0xdd   : > { %1651 = dma.done.wait (%p2318_p11), [#allocation9], 192  }
  0xde   : > { %1653 = vsyncadd (%p2319_p8), [#allocation9], 4294967104  ;;  %p2320_p5 = pmov %p2317_p4 }
  0xdf   : > { %p2321_p9 = pmov %p2317_p4 }
  0xe0   : > { %1655 = dma.done.wait (%p2320_p5), [#allocation12], 192  }
  0xe1   : > { %1657 = vsyncadd (%p2321_p9), [#allocation12], 4294967104  ;;  %p2322_p7 = pmov %p2317_p4 }
  0xe2   : > { %p2323_p10 = pmov %p2317_p4 }
  0xe3   : > { %1659 = dma.done.wait (%p2322_p7), [#allocation15], 128  }
  0xe4   : > { %1661 = vsyncadd (%p2323_p10), [#allocation15], 4294967168  ;;  %v411_v0 = vlaneseq  ;;  %v1690_v1 = vmov 0   ;;  %v464_v7 = vld [vmem:[#allocation5] sm:$0xff]  ;;  %v472_v9 = vld [vmem:[#allocation7] sm:$0xff]  ;;  %v1691_v10 = vmov 0.0  }
  0xe5   : > { %1265 = vset.pattern.permute.xlu0 %v1690_v1  ;;  %718 = vmatprep.mubr.bf16.mxu0 %v1690_v1  ;;  %s1692_s12 = smov 2   ;;  %s1693_s16 = smov 18   ;;  %v2052_v19 = vld [vmem:[%s2025_s9] sm:$0xff]  ;;  %v2056_v21 = vld [vmem:[%s2025_s9 + $0x8] sm:$0xff]  ;;  %vm486_vm4 = vcmask 138240   ;;  %vm501_vm5 = vcmask 15360  }
  0xe6   : > { %v412_v2 = vand.u32 127, %v411_v0  ;;  %1331 = vset.pattern.permute.xlu1 %v1690_v1  ;;  %929 = vmatprep.mubr.bf16.mxu1 %v1690_v1  ;;  %s1694_s23 = smov 34   ;;  %s1695_s24 = smov 17   ;;  %vm515_vm6 = vcmask 130048   ;;  %vm527_vm7 = vcmask 146432   ;;  %vm539_vm8 = vcmask 261120  }
  0xe7   : > { %467 = vperm.xlu0 %1265, %v464_v7   ;;  %s1696_s25 = smov 16   ;;  %s1697_s15 = smov 32   ;;  %vm551_vm9 = vcmask 277504   ;;  %vm567_vm10 = vcmask 1039360   ;;  %vm595_vm11 = vcmask 916480   ;;  %vm581_vm12 = vcmask 1031168  }
  0xe8   : > { %v413_v3 = vadd.s32 128, %v412_v2  ;;  %v418_v4 = vand.u32 15, %v412_v2  ;;  %s1698_s20 = smov 127   ;;  %s1699_s18 = smov 95   ;;  %vm606_vm13 = vcmask 908288   ;;  %vm620_vm14 = vcmask 900096  }
  0xe9   : > { %s1700_s22 = smov 111   ;;  %s1701_s14 = smov 112   ;;  %vm634_vm15 = vcmask 785408  }
  0xea   : > { %v425_v5 = vand.u32 15, %v413_v3  ;;  %v450_v6 = vadd.s32 1, %v418_v4  ;;  %v438_v14 = vadd.s32 4294967295, %v418_v4  ;;  %s1702_s9 = smov 126   ;;  %p2324_p13 = scmp.ne.s32.totalorder %s2312_s10, 0 }
  0xeb   : > { %475 = vperm.xlu0 %1265, %v472_v9   ;;  %v735_v9 = vld [vmem:[#allocation11] sm:$0xff] }
  0xec   : > { %v451_v8 = vadd.s32 1, %v425_v5  ;;  %vm454_vm0 = vcmp.lt.s32.totalorder %v450_v6, 16  ;;  %v439_v15 = vadd.s32 4294967295, %v425_v5  ;;  %vm440_vm2 = vcmp.ge.s32.totalorder %v438_v14, 0 }
  0xed   : > { %v1119_v11 = vsel %vm454_vm0, 1.0, %v1691_v10  ;;  %v2047_v16 = vsel %vm440_vm2, 1.0, %v1691_v10  ;;  %vm645_vm0 = vcmask 777216   ;;  %vm679_vm2 = vcmask 1043456  }
  0xee   : > { %vm455_vm1 = vcmp.lt.s32.totalorder %v451_v8, 16  ;;  %vm441_vm3 = vcmp.ge.s32.totalorder %v439_v15, 0 }
  0xef   : > { %v1120_v12 = vsel %vm455_vm1, 1.0, %v1691_v10  ;;  %v2049_v17 = vsel %vm441_vm3, 1.0, %v1691_v10  ;;  %v727_v10 = vld [vmem:[#allocation10] sm:$0xff]  ;;  %vm659_vm1 = vcmask 769024   ;;  %vm675_vm3 = vcmask 588800  }
  0xf0   : > { %v1266_v13 = vpack.i.bf16 %v1120_v12, %v1119_v11  ;;  %v1271_v26 = vpack.i.bf16 %v2049_v17, %v2047_v16 }
  0xf2   : > { %1267 = vrot.lane.b32.xlu0 %v1266_v13, %s1692_s12  ;;  %s1703_s12 = smov 110  }
  0xf6   : > { %1277 = vrot.lane.b32.xlu0 %v1266_v13, %s1693_s16  ;;  %s1704_s16 = smov 96  }
  0xfa   : > { %1287 = vrot.lane.b32.xlu0 %v1266_v13, %s1694_s23  ;;  %s1705_s23 = smov 94  }
 0x166   : > { %v468_v18 = vpop.permute.xlu0 %467 }
 0x167   : > { %v470_v20 = vmul.f32 %v468_v18, %v2052_v19  ;;  %v471_v24 = vmul.f32 %v468_v18, %v2056_v21 }
 0x16a   : > { %v476_v22 = vpop.permute.xlu0 %475 }
 0x16b   : > { %v478_v23 = vadd.f32 %v476_v22, %v470_v20  ;;  %v479_v25 = vadd.f32 %v476_v22, %v471_v24 }
 0x16d   : > { %482 = vrot.lane.b32.xlu1 %v478_v23, %s1695_s24 }
 0x16e   : > { %v1268_v29 = vpop.permute.xlu0 %1267 }
 0x16f   : > { %v2076_v34 = vunpack.i.h.bf16 %v1268_v29  ;;  %v2080_v36 = vunpack.i.l.bf16 %v1268_v29 }
 0x171   : > { %484 = vrot.lane.b32.xlu1 %v479_v25, %s1695_s24  ;;  %v2088_v40 = vsel %vm501_vm5, %v2080_v36, %v2076_v34 }
 0x172   : > { %v1278_v39 = vpop.permute.xlu0 %1277 }
 0x173   : > { %v2090_v41 = vunpack.i.h.bf16 %v1278_v39  ;;  %v2101_v46 = vunpack.i.l.bf16 %v1278_v39 }
 0x175   : > { %1272 = vrot.lane.b32.xlu1 %v1271_v26, %s1696_s25  ;;  %v2109_v50 = vsel %vm527_vm7, %v2101_v46, %v2090_v41  ;;  %s409_s25 = scalar_lea.vmem [#allocation16], %s1108_s21 }
 0x176   : > { %v1288_v58 = vpop.permute.xlu0 %1287 }
 0x177   : > { %v2136_v63 = vunpack.i.h.bf16 %v1288_v58  ;;  %v2140_v0 = vunpack.i.l.bf16 %v1288_v58 }
 0x179   : > { %1282 = vrot.lane.b32.xlu1 %v1271_v26, %s1697_s15  ;;  %v2146_v3 = vsel %vm551_vm9, %v2140_v0, %v2136_v63  ;;  %s957_s15 = sshll.u32 %s409_s25, 4  ;;  %s2253_s15 = int_to_ptr.vmem [resolvable:$true] %s957_s15 }
 0x17a   : > { %s1598_s21 = scalar_lea.vmem %s2253_s15, 256 }
 0x17b   : > { %p1599_p12 = scmp.ne.s32.totalorder %s2253_s15, %s1598_s21 }
 0x17d   : > { %p1600_p1 = pnand %p1599_p12, %p2324_p13 }
 0x17f   : > { %p1601_p3 = pneg %p1600_p1 }
 0x1df   : > { %v483_v27 = vpop.permute.xlu1 %482 }
 0x1e0   : > { %v2064_v28 = vsel %vm486_vm4, 0.0, %v483_v27 }
 0x1e1   : > { %561 = vrot.lane.b32.xlu0 %v2064_v28, %s1698_s20  ;;  %v506_v59 = vmul.f32 %v2080_v36, %v2064_v28  ;;  %v532_v2 = vmul.f32 %v2101_v46, %v2064_v28  ;;  %v556_v6 = vmul.f32 %v2140_v0, %v2064_v28  ;;  %v493_v18 = vmul.f32 %v2047_v16, %v2064_v28 }
 0x1e3   : > { %v485_v30 = vpop.permute.xlu1 %484 }
 0x1e4   : > { %v2069_v31 = vsel %vm486_vm4, %v483_v27, %v485_v30  ;;  %v2072_v32 = vsel %vm486_vm4, %v485_v30, 0.0 }
 0x1e5   : > { %v1301_v33 = vpack.i.bf16 %v2072_v32, %v2069_v31  ;;  %v507_v48 = vmul.f32 %v2088_v40, %v2069_v31  ;;  %v508_v49 = vmul.f32 %v2076_v34, %v2072_v32  ;;  %v533_v55 = vmul.f32 %v2109_v50, %v2069_v31 }
 0x1e6   : > { %v534_v56 = vmul.f32 %v2090_v41, %v2072_v32  ;;  %v557_v5 = vmul.f32 %v2146_v3, %v2069_v31  ;;  %v558_v8 = vmul.f32 %v2136_v63, %v2072_v32  ;;  %v494_v15 = vmul.f32 %v2049_v17, %v2069_v31 }
 0x1e7   : > { %1302 = vrot.lane.b32.xlu0 %v1301_v33, %s1699_s18  ;;  %1292 = vrot.lane.b32.xlu1 %v1301_v33, %s1698_s20  ;;  %v1273_v35 = vpop.permute.xlu1 %1272  ;;  %v1306_v53 = vpack.i.bf16 %v508_v49, %v507_v48 }
 0x1e8   : > { %v2082_v37 = vunpack.i.h.bf16 %v1273_v35  ;;  %v2084_v38 = vunpack.i.l.bf16 %v1273_v35  ;;  %v1316_v60 = vpack.i.bf16 %v534_v56, %v533_v55  ;;  %v1326_v7 = vpack.i.bf16 %v557_v5, %v556_v6 }
 0x1ea   : > { %v2094_v42 = vsel %vm515_vm6, %v2084_v38, %v2082_v37  ;;  %v522_v43 = vmul.f32 %v2082_v37, %v2072_v32  ;;  %v520_v54 = vmul.f32 %v2084_v38, %v2064_v28 }
 0x1eb   : > { %1297 = vrot.lane.b32.xlu1 %v1301_v33, %s1700_s22  ;;  %v1283_v44 = vpop.permute.xlu1 %1282  ;;  %v521_v45 = vmul.f32 %v2094_v42, %v2069_v31 }
 0x1ec   : > { %v2111_v51 = vunpack.i.h.bf16 %v1283_v44  ;;  %v2113_v52 = vunpack.i.l.bf16 %v1283_v44 }
 0x1ed   : > { %v1311_v47 = vpack.i.bf16 %v522_v43, %v521_v45 }
 0x1ee   : > { %v2126_v57 = vsel %vm539_vm8, %v2113_v52, %v2111_v51  ;;  %v546_v62 = vmul.f32 %v2111_v51, %v2072_v32  ;;  %v544_v4 = vmul.f32 %v2113_v52, %v2064_v28 }
 0x1ef   : > { %600 = vrot.lane.b32.xlu1 %v2064_v28, %s1700_s22  ;;  %1312 = vrot.lane.b32.xlu0 %v1311_v47, %s1701_s14  ;;  %v545_v61 = vmul.f32 %v2126_v57, %v2069_v31 }
 0x1f1   : > { %v1321_v1 = vpack.i.bf16 %v546_v62, %v545_v61 }
 0x1f3   : > { %1307 = vrot.lane.b32.xlu1 %v1306_v53, %s1702_s9  ;;  %589 = vrot.lane.b32.xlu0 %v520_v54, %s1701_s14 }
 0x1f7   : > { %575 = vrot.lane.b32.xlu1 %v506_v59, %s1702_s9  ;;  %1317 = vrot.lane.b32.xlu0 %v1316_v60, %s1703_s12 }
 0x1fb   : > { %1322 = vrot.lane.b32.xlu1 %v1321_v1, %s1704_s16  ;;  %614 = vrot.lane.b32.xlu0 %v532_v2, %s1703_s12 }
 0x1ff   : > { %628 = vrot.lane.b32.xlu1 %v544_v4, %s1704_s16  ;;  %639 = vrot.lane.b32.xlu0 %v2064_v28, %s1699_s18 }
 0x203   : > { %1327 = vrot.lane.b32.xlu1 %v1326_v7, %s1705_s23  ;;  %657 = vrot.lane.b32.xlu0 %v558_v8, %s1705_s23 }
 0x207   : > { %738 = vperm.xlu0 %1265, %v735_v9   ;;  %730 = vperm.xlu1 %1331, %v727_v10  }
 0x253   : > { %v562_v11 = vpop.permute.xlu0 %561 }
 0x259   : > { %v1293_v12 = vpop.permute.xlu1 %1292  ;;  %v1303_v23 = vpop.permute.xlu0 %1302 }
 0x25a   : > { %v1295_v13 = vunpack.i.h.bf16 %v1293_v12  ;;  %v1294_v14 = vunpack.i.l.bf16 %v1293_v12  ;;  %v1305_v59 = vunpack.i.h.bf16 %v1303_v23  ;;  %v1304_v60 = vunpack.i.l.bf16 %v1303_v23 }
 0x25c   : > { %v569_v20 = vsel %vm567_vm10, %v1294_v14, %v1295_v13  ;;  %v568_v22 = vsel %vm567_vm10, %v562_v11, %v1294_v14  ;;  %v647_v11 = vsel %vm645_vm0, %v1304_v60, %v1305_v59 }
 0x25d   : > { %v1298_v24 = vpop.permute.xlu1 %1297  ;;  %v665_v25 = vpack.c.bf16 %v569_v20, %v494_v15  ;;  %v664_v26 = vpack.c.bf16 %v568_v22, %v493_v18 }
 0x25e   : > { %v1300_v39 = vunpack.i.h.bf16 %v1298_v24  ;;  %v1299_v43 = vunpack.i.l.bf16 %v1298_v24 }
 0x25f   : > { %686 = vmatprep.subr.bf16.mxu0 %v665_v25 }
 0x260   : > { %687 = vmatpush1.bf16.msra.mxu0 %v664_v26  ;;  %v608_v61 = vsel %vm606_vm13, %v1299_v43, %v1300_v39 }
 0x261   : > { %v601_v27 = vpop.permute.xlu1 %600  ;;  %v1313_v29 = vpop.permute.xlu0 %1312 }
 0x262   : > { %v1315_v30 = vunpack.i.h.bf16 %v1313_v29  ;;  %v1314_v32 = vunpack.i.l.bf16 %v1313_v29  ;;  %v607_v5 = vsel %vm606_vm13, %v601_v27, %v1299_v43 }
 0x264   : > { %v597_v45 = vsel %vm595_vm11, %v1314_v32, %v1315_v30 }
 0x265   : > { %v1308_v33 = vpop.permute.xlu1 %1307  ;;  %v590_v31 = vpop.permute.xlu0 %589 }
 0x266   : > { %v1310_v35 = vunpack.i.h.bf16 %v1308_v33  ;;  %v1309_v28 = vunpack.i.l.bf16 %v1308_v33  ;;  %v596_v53 = vsel %vm595_vm11, %v590_v31, %v1314_v32  ;;  %v674_v33 = vld [vmem:[#allocation8] sm:$0xf] }
 0x268   : > { %v583_v44 = vsel %vm581_vm12, %v1309_v28, %v1310_v35 }
 0x269   : > { %v576_v47 = vpop.permute.xlu1 %575  ;;  %v1318_v48 = vpop.permute.xlu0 %1317  ;;  %v667_v49 = vpack.c.bf16 %v597_v45, %v583_v44 }
 0x26a   : > { %v582_v54 = vsel %vm581_vm12, %v576_v47, %v1309_v28  ;;  %v1320_v55 = vunpack.i.h.bf16 %v1318_v48  ;;  %v1319_v56 = vunpack.i.l.bf16 %v1318_v48 }
 0x26b   : > { %v666_v58 = vpack.c.bf16 %v596_v53, %v582_v54  ;;  %688 = vmatprep.subr.bf16.mxu0 %v667_v49 }
 0x26c   : > { %v622_v62 = vsel %vm620_vm14, %v1319_v56, %v1320_v55 }
 0x26d   : > { %v1323_v1 = vpop.permute.xlu1 %1322  ;;  %v615_v2 = vpop.permute.xlu0 %614  ;;  %689 = vmatpush1.bf16.msra.mxu0 %v666_v58  ;;  %v669_v4 = vpack.c.bf16 %v622_v62, %v608_v61 }
 0x26e   : > { %v1325_v6 = vunpack.i.h.bf16 %v1323_v1  ;;  %v1324_v7 = vunpack.i.l.bf16 %v1323_v1  ;;  %v621_v8 = vsel %vm620_vm14, %v615_v2, %v1319_v56 }
 0x26f   : > { %v668_v9 = vpack.c.bf16 %v621_v8, %v607_v5  ;;  %690 = vmatprep.subr.bf16.mxu0 %v669_v4 }
 0x270   : > { %v636_v10 = vsel %vm634_vm15, %v1324_v7, %v1325_v6 }
 0x271   : > { %v629_v12 = vpop.permute.xlu1 %628  ;;  %v640_v13 = vpop.permute.xlu0 %639  ;;  %691 = vmatpush1.bf16.msra.mxu0 %v668_v9  ;;  %v671_v14 = vpack.c.bf16 %v647_v11, %v636_v10 }
 0x272   : > { %v635_v15 = vsel %vm634_vm15, %v629_v12, %v1324_v7  ;;  %v646_v18 = vsel %vm645_vm0, %v640_v13, %v1304_v60 }
 0x273   : > { %v670_v20 = vpack.c.bf16 %v646_v18, %v635_v15  ;;  %692 = vmatprep.subr.bf16.mxu0 %v671_v14 }
 0x275   : > { %v1328_v22 = vpop.permute.xlu1 %1327  ;;  %693 = vmatpush1.bf16.msra.mxu0 %v670_v20  ;;  %v658_v25 = vpop.permute.xlu0 %657 }
 0x276   : > { %v1330_v23 = vunpack.i.h.bf16 %v1328_v22  ;;  %v1329_v24 = vunpack.i.l.bf16 %v1328_v22 }
 0x278   : > { %v661_v26 = vsel %vm659_vm1, %v1330_v23, %v658_v25  ;;  %v660_v27 = vsel %vm659_vm1, %v1329_v24, %v1330_v23 }
 0x279   : > { %v673_v29 = vpack.c.bf16 %v661_v26, %v661_v26  ;;  %v672_v30 = vpack.c.bf16 %v660_v27, %v660_v27 }
 0x27b   : > { %1121 = vmatprep.subr.msk.bf16.mxu0 %vm679_vm2, %v673_v29  ;;  %v681_v32 = vsel %vm679_vm2, %v672_v30, 0 }
 0x27c   : > { %695 = vmatpush1.bf16.msra.mxu0 %v681_v32 }
 0x27f   : > { %1122 = vmatmul.mubr.msk.bf16.vlgmr.msra.gmra.mrb[0].mxu0 %vm675_vm3, %v674_v33 }
 0x286   : > { %v731_v31 = vpop.permute.xlu1 %730  ;;  %v739_v43 = vpop.permute.xlu0 %738 }
 0x352   : > { %v720_v35 = vpop.f32.mrb[0].mxu0 }
 0x353   : > { %v733_v28 = vmul.f32 %v731_v31, %v720_v35  ;;  %v722_v39 = vpop.f32.mrb[1].mxu0 }
 0x354   : > { %v734_v44 = vmul.f32 %v731_v31, %v722_v39  ;;  %v724_v45 = vpop.f32.mrb[2].mxu0 }
 0x355   : > { %v741_v47 = vadd.f32 %v739_v43, %v733_v28  ;;  %v725_v48 = vpop.f32.mrb[3].mxu0 }
 0x356   : > { %v742_v49 = vadd.f32 %v739_v43, %v734_v44 }
 0x357   : > { %v743_v53 = vmax.f32 %v741_v47, 0.0 }
 0x358   : > { %v744_v54 = vmax.f32 %v742_v49, 0.0 }
 0x359   : > { %747 = vrot.lane.b32.xlu1 %v743_v53, %s1695_s24 }
 0x35a   : > { %749 = vrot.lane.b32.xlu0 %v744_v54, %s1695_s24  ;;  %s1131_s24 = sshll.u32 %s1773_s11, 8  ;;  %s943_s11 = scalar_lea.sflag [#allocation4], %s2019_s19 }
 0x3cb   : > { %v748_v55 = vpop.permute.xlu1 %747 }
 0x3cc   : > { %v755_v56 = vsel %vm486_vm4, 0.0, %v748_v55  ;;  %v750_v58 = vpop.permute.xlu0 %749 }
 0x3cd   : > { %v751_v59 = vsel %vm486_vm4, %v748_v55, %v750_v58  ;;  %v756_v60 = vsel %vm486_vm4, %v750_v58, 0.0  ;;  %812 = vrot.lane.b32.xlu1 %v755_v56, %s1700_s22  ;;  %776 = vrot.lane.b32.xlu0 %v755_v56, %s1698_s20  ;;  %v762_v62 = vmul.f32 %v2084_v38, %v755_v56  ;;  %v765_v1 = vmul.f32 %v2101_v46, %v755_v56 }
 0x3ce   : > { %v1342_v61 = vpack.i.bf16 %v756_v60, %v751_v59  ;;  %v759_v2 = vmul.f32 %v2080_v36, %v755_v56  ;;  %v763_v4 = vmul.f32 %v751_v59, %v2094_v42  ;;  %v764_v5 = vmul.f32 %v2082_v37, %v756_v60 }
 0x3cf   : > { %v760_v6 = vmul.f32 %v751_v59, %v2088_v40  ;;  %v761_v7 = vmul.f32 %v2076_v34, %v756_v60  ;;  %v766_v9 = vmul.f32 %v751_v59, %v2109_v50  ;;  %v767_v46 = vmul.f32 %v2090_v41, %v756_v60 }
 0x3d0   : > { %v1352_v38 = vpack.i.bf16 %v764_v5, %v763_v4  ;;  %v768_v37 = vmul.f32 %v2113_v52, %v755_v56  ;;  %v769_v40 = vmul.f32 %v751_v59, %v2126_v57  ;;  %v770_v34 = vmul.f32 %v2111_v51, %v756_v60  ;;  %v882_v51 = vld [vmem:[#allocation14] sm:$0xff] }
 0x3d1   : > { %1343 = vrot.lane.b32.xlu0 %v1342_v61, %s1699_s18  ;;  %1333 = vrot.lane.b32.xlu1 %v1342_v61, %s1698_s20  ;;  %v1347_v8 = vpack.i.bf16 %v761_v7, %v760_v6  ;;  %v1357_v36 = vpack.i.bf16 %v767_v46, %v766_v9  ;;  %v771_v50 = vmul.f32 %v2140_v0, %v755_v56 }
 0x3d2   : > { %v1362_v42 = vpack.i.bf16 %v770_v34, %v769_v40  ;;  %v772_v41 = vmul.f32 %v751_v59, %v2146_v3  ;;  %v773_v10 = vmul.f32 %v2136_v63, %v756_v60  ;;  %v758_v3 = vmul.f32 %v2049_v17, %v751_v59 }
 0x3d3   : > { %v757_v15 = vmul.f32 %v2047_v16, %v755_v56 }
 0x3d4   : > { %v1367_v52 = vpack.i.bf16 %v772_v41, %v771_v50 }
 0x3d5   : > { %802 = vrot.lane.b32.xlu0 %v762_v62, %s1701_s14  ;;  %1338 = vrot.lane.b32.xlu1 %v1342_v61, %s1700_s22  ;;  %s2251_s22 = scalar_lea.hbm %s2303_s8, %s1131_s24 }
 0x3d9   : > { %825 = vrot.lane.b32.xlu0 %v765_v1, %s1703_s12  ;;  %789 = vrot.lane.b32.xlu1 %v759_v2, %s1702_s9 }
 0x3dd   : > { %1353 = vrot.lane.b32.xlu0 %v1352_v38, %s1701_s14  ;;  %1348 = vrot.lane.b32.xlu1 %v1347_v8, %s1702_s9  ;;  %s1706_s14 = smov [#allocation16]  }
 0x3de   : > { %s1602_s9 = sshll.u32 %s1706_s14, 4  ;;  %s1603_s9 = int_to_ptr.vmem [resolvable:$false] %s1602_s9 }
 0x3df   : > { %p1605_p2 = scmp.lt.s32.totalorder %s2253_s15, %s1603_s9 }
 0x3e1   : > { %1358 = vrot.lane.b32.xlu0 %v1357_v36, %s1703_s12  ;;  %838 = vrot.lane.b32.xlu1 %v768_v37, %s1704_s16  ;;  %s1604_s12 = scalar_lea.vmem %s1603_s9, 512 }
 0x3e2   : > { %p1606_p0 = scmp.lt.s32.totalorder %s1604_s12, %s1598_s21 }
 0x3e4   : > { %p1607_p6 = por %p1606_p0, %p1605_p2 }
 0x3e5   : > { %848 = vrot.lane.b32.xlu0 %v755_v56, %s1699_s18  ;;  %1363 = vrot.lane.b32.xlu1 %v1362_v42, %s1704_s16 }
 0x3e6   : > { %p1608_p4 = pnand %p1607_p6, %p1601_p3 }
 0x3e9   : > { %865 = vrot.lane.b32.xlu0 %v773_v10, %s1705_s23  ;;  %1368 = vrot.lane.b32.xlu1 %v1367_v52, %s1705_s23 }
 0x3ed   : > { %885 = vperm.xlu1 %1331, %v882_v51   ;;  %v881_v51 = vld [vmem:[#allocation13] sm:$0xf] }
 0x43f   : > { %v813_v57 = vpop.permute.xlu1 %812  ;;  %v777_v11 = vpop.permute.xlu0 %776 }
 0x443   : > { %v1334_v12 = vpop.permute.xlu1 %1333  ;;  %v1344_v13 = vpop.permute.xlu0 %1343 }
 0x444   : > { %v1336_v0 = vunpack.i.h.bf16 %v1334_v12  ;;  %v1335_v14 = vunpack.i.l.bf16 %v1334_v12  ;;  %v1346_v54 = vunpack.i.h.bf16 %v1344_v13  ;;  %v1345_v55 = vunpack.i.l.bf16 %v1344_v13 }
 0x446   : > { %v783_v18 = vsel %vm567_vm10, %v1335_v14, %v1336_v0  ;;  %v782_v63 = vsel %vm567_vm10, %v777_v11, %v1335_v14  ;;  %v855_v8 = vsel %vm645_vm0, %v1345_v55, %v1346_v54 }
 0x447   : > { %v1339_v20 = vpop.permute.xlu1 %1338  ;;  %v803_v22 = vpop.permute.xlu0 %802  ;;  %v872_v23 = vpack.c.bf16 %v783_v18, %v758_v3  ;;  %v871_v24 = vpack.c.bf16 %v782_v63, %v757_v15 }
 0x448   : > { %v1341_v31 = vunpack.i.h.bf16 %v1339_v20  ;;  %v1340_v16 = vunpack.i.l.bf16 %v1339_v20 }
 0x449   : > { %897 = vmatprep.subr.bf16.mxu1 %v872_v23 }
 0x44a   : > { %898 = vmatpush1.bf16.msra.mxu1 %v871_v24  ;;  %v819_v56 = vsel %vm606_vm13, %v1340_v16, %v1341_v31  ;;  %v818_v59 = vsel %vm606_vm13, %v813_v57, %v1340_v16 }
 0x44b   : > { %v790_v25 = vpop.permute.xlu1 %789  ;;  %v826_v26 = vpop.permute.xlu0 %825 }
 0x44f   : > { %v1349_v27 = vpop.permute.xlu1 %1348  ;;  %v1354_v29 = vpop.permute.xlu0 %1353 }
 0x450   : > { %v1351_v30 = vunpack.i.h.bf16 %v1349_v27  ;;  %v1350_v32 = vunpack.i.l.bf16 %v1349_v27  ;;  %v1356_v33 = vunpack.i.h.bf16 %v1354_v29  ;;  %v1355_v17 = vunpack.i.l.bf16 %v1354_v29 }
 0x452   : > { %v796_v35 = vsel %vm581_vm12, %v1350_v32, %v1351_v30  ;;  %v809_v28 = vsel %vm595_vm11, %v1355_v17, %v1356_v33  ;;  %v795_v39 = vsel %vm581_vm12, %v790_v25, %v1350_v32  ;;  %v808_v43 = vsel %vm595_vm11, %v803_v22, %v1355_v17 }
 0x453   : > { %v839_v44 = vpop.permute.xlu1 %838  ;;  %v1359_v45 = vpop.permute.xlu0 %1358  ;;  %v874_v47 = vpack.c.bf16 %v809_v28, %v796_v35  ;;  %v873_v48 = vpack.c.bf16 %v808_v43, %v795_v39 }
 0x454   : > { %v1361_v49 = vunpack.i.h.bf16 %v1359_v45  ;;  %v1360_v53 = vunpack.i.l.bf16 %v1359_v45 }
 0x455   : > { %899 = vmatprep.subr.bf16.mxu1 %v874_v47 }
 0x456   : > { %900 = vmatpush1.bf16.msra.mxu1 %v873_v48  ;;  %v832_v58 = vsel %vm620_vm14, %v1360_v53, %v1361_v49  ;;  %v831_v60 = vsel %vm620_vm14, %v826_v26, %v1360_v53 }
 0x457   : > { %v1364_v61 = vpop.permute.xlu1 %1363  ;;  %v849_v62 = vpop.permute.xlu0 %848  ;;  %v876_v1 = vpack.c.bf16 %v832_v58, %v819_v56  ;;  %v875_v2 = vpack.c.bf16 %v831_v60, %v818_v59 }
 0x458   : > { %v1366_v4 = vunpack.i.h.bf16 %v1364_v61  ;;  %v1365_v5 = vunpack.i.l.bf16 %v1364_v61  ;;  %v854_v7 = vsel %vm645_vm0, %v849_v62, %v1345_v55 }
 0x459   : > { %901 = vmatprep.subr.bf16.mxu1 %v876_v1 }
 0x45a   : > { %v844_v6 = vsel %vm634_vm15, %v839_v44, %v1365_v5  ;;  %902 = vmatpush1.bf16.msra.mxu1 %v875_v2  ;;  %v845_v38 = vsel %vm634_vm15, %v1365_v5, %v1366_v4 }
 0x45b   : > { %v877_v9 = vpack.c.bf16 %v854_v7, %v844_v6  ;;  %v1369_v46 = vpop.permute.xlu1 %1368  ;;  %v878_v36 = vpack.c.bf16 %v855_v8, %v845_v38  ;;  %v866_v34 = vpop.permute.xlu0 %865 }
 0x45c   : > { %v1371_v37 = vunpack.i.h.bf16 %v1369_v46  ;;  %v1370_v40 = vunpack.i.l.bf16 %v1369_v46 }
 0x45d   : > { %903 = vmatprep.subr.bf16.mxu1 %v878_v36 }
 0x45e   : > { %v868_v42 = vsel %vm659_vm1, %v1371_v37, %v866_v34  ;;  %904 = vmatpush1.bf16.msra.mxu1 %v877_v9  ;;  %v867_v50 = vsel %vm659_vm1, %v1370_v40, %v1371_v37 }
 0x45f   : > { %v880_v41 = vpack.c.bf16 %v868_v42, %v868_v42  ;;  %v879_v10 = vpack.c.bf16 %v867_v50, %v867_v50 }
 0x461   : > { %1123 = vmatprep.subr.msk.bf16.mxu1 %vm679_vm2, %v880_v41  ;;  %v892_v52 = vsel %vm679_vm2, %v879_v10, 0 }
 0x462   : > { %906 = vmatpush1.bf16.msra.mxu1 %v892_v52 }
 0x465   : > { %1124 = vmatmul.mubr.msk.bf16.vlgmr.msra.gmra.mrb[0].mxu1 %vm675_vm3, %v881_v51 }
 0x46c   : > { %v886_v57 = vpop.permute.xlu1 %885 }
 0x538   : > { %v931_v11 = vpop.f32.mrb[0].mxu1 }
 0x539   : > { %v932_v12 = vadd.f32 %v931_v11, %v886_v57  ;;  %v933_v13 = vpop.f32.mrb[1].mxu1 }
 0x53a   : > { %v934_v0 = vadd.f32 %v933_v13, %v886_v57  ;;  %v935_v14 = vpop.f32.mrb[2].mxu1 }
 0x53b   : > { %v938_v3 = vadd.f32 %v932_v12, %v2052_v19  ;;  %v936_v15 = vpop.f32.mrb[3].mxu1 }
 0x53c   : > { %v939_v18 = vadd.f32 %v934_v0, %v2056_v21 }
 0x53d   : > { %940 = vst [vmem:[%s409_s25] sm:$0xff] %v938_v3 }
 0x53e   : > { %941 = vst [vmem:[%s409_s25 + $0x8] sm:$0xff] %v939_v18 }
 0x53f   : > { %1611 = shalt.err (!%p1608_p4)
}
 0x540   : > { %s1612_s19 = scalar_lea.hbm %s2251_s22, 256  ;;  %s1616_s24 = scalar_lea.hbm %s2303_s8, 512 }
 0x541   : > { %p1613_p11 = scmp.ne.s32.totalorder %s2251_s22, %s1612_s19  ;;  %p1617_p9 = scmp.lt.u32.totalorder %s2251_s22, %s2303_s8 }
 0x542   : > { %p1618_p7 = scmp.lt.u32.totalorder %s1616_s24, %s1612_s19  ;;  %p1620_p12 = scmp.lt.u32.totalorder %s1612_s19, %s2251_s22 }
 0x543   : > { %p1614_p8 = pnand %p1613_p11, %p2324_p13 }
 0x544   : > { %p1619_p10 = por %p1618_p7, %p1617_p9 }
 0x545   : > { %p1615_p5 = pneg %p1614_p8 }
 0x546   : > { %p1621_p1 = por %p1620_p12, %p1619_p10 }
 0x548   : > { %p1622_p3 = pnand %p1621_p1, %p1615_p5 }
 0x54a   : > { %1625 = shalt.err (!%p1622_p3)
}
 0x54b   : > { %1162 = dma.vmem_to_hbm [thread:$0]  (%p2324_p13), %s2253_s15, 256, %s2251_s22, %s943_s11  }
 0x54c PF: > { %s969_s18 = sand.u32 1, %s1668_s27   ;;  %p2325_p2 = scmp.ne.s32.totalorder %s2313_s13, 0 }
 0x54d   : > { %p2326_p0 = scmp.ge.s32.totalorder %s1680_s30, 2  ;;  %s970_s21 = scalar_lea.sflag [#allocation4], %s969_s18 }
 0x54f   : > { %p1191_p6 = pnand %p2326_p0, %p2325_p2 }
 0x551   : > { %1663 = dma.done.wait (!%p1191_p6), %s970_s21, 256  }
 0x552   : > { %1665 = vsyncadd (!%p1191_p6), %s970_s21, 4294967040  ;;  %p25_p4 = scmp.ge.s32.totalorder %s1949_s17, 4   ;;  %s2327_s27 = smov %s1672_s28 }
 0x553   : > { %s2328_s28 = smov %s1676_s29  ;;  %s2329_s29 = smov %s1961_s26 }
 0x554   : > { %s2330_s30 = smov %s1949_s17  ;;  %27 = sbr.rel (!%p25_p4) target bundleno = 9 (0x9), region = 125 }
 0x55b   :  { %975 = vsyncpa [#allocation3], 1 }
 0x55c   :  { %977 = vsyncpa [#allocation3 + $0x1], 1 }
 0x55d   :  { %978 = vsyncpa [#allocation6], 1 }
 0x55e   :  { %979 = vsyncpa [#allocation9], 1 }
 0x55f   :  { %980 = vsyncpa [#allocation12], 1 }
 0x560   :  { %981 = vsyncpa [#allocation15], 1 }
 0x561   :  { %982 = vsyncpa [#allocation4], 1 }
 0x562   :  { %984 = vsyncpa [#allocation4 + $0x1], 1 }

</bundles_post_ra>
